<compile_context>
chip_gen: v5e
topology: v5e:2x2
jax: 0.10.0
libtpu: 0.0.40
codegen_flags: <defaults>
</compile_context>

<pallas_src>
import functools

import jax
import jax.numpy as jnp
from jax.experimental import pallas as pl
from jax.experimental.pallas import tpu as pltpu


def _round_up(x, m):
    return ((x + m - 1) // m) * m


# ----------------------------- fused Pallas kernel ---------------------------

def fftnet_fused_kernel(xw_ref, w0_ref, b12_ref, b3_ref, w3_ref,
                        w1r_ref, w2r_ref, wfc_ref, bfc_ref, o_ref,
                        *, ks, tq):
    """One output time tile through the whole FFTNet stack + final Linear.

    xw_ref : (1, tq + sum(ks), 1)  input window (tile + halo), 1 channel, f32.
    w0_ref : (2, Hp)    layer-0 [w1; w2] row vectors (in_channels == 1), f32.
    b12_ref: (L, Hp)    per-layer b1 + b2, f32.
    b3_ref : (L, Hp)    per-layer conv2 bias, f32.
    w3_ref : (L, Hp, Hp) per-layer conv2 weights, stored (in, out), bf16.
    w1r_ref/w2r_ref: (max(L-1,1), Hp, Hp) conv1_1 / conv1_2 layers 1..L-1, bf16.
    wfc_ref: (Hp, Op) bf16, bfc_ref: (1, Op) f32 -- final nn.Linear.
    o_ref  : (1, tq, Op) f32.
    """
    L = len(ks)
    bf16 = jnp.bfloat16
    x = xw_ref[0]                                        # (tile_in, 1) f32

    # ---- layer 0: in_channels == 1 -> broadcast multiply on the VPU (f32) ---
    n = tq + sum(ks[1:])
    z = (x[:n, :] * w0_ref[pl.ds(0, 1), :]
         + x[ks[0]:ks[0] + n, :] * w0_ref[pl.ds(1, 1), :]
         + b12_ref[pl.ds(0, 1), :])
    h = jnp.maximum(z, 0.0).astype(bf16)
    a = jnp.maximum(
        jnp.dot(h, w3_ref[0], preferred_element_type=jnp.float32)
        + b3_ref[pl.ds(0, 1), :], 0.0)

    # ---- layers 1..L-1: bf16 MXU matmuls, f32 accumulation; K-shift = slice -
    # TODO(synk): if bundle dumps show the misaligned K-shift slices (k=1,2,4)
    # surfacing on the critical path at small H, express them with pltpu.roll.
    for idx in range(1, L):
        k = ks[idx]
        n = tq + sum(ks[idx + 1:])
        z = (jnp.dot(a[:n, :].astype(bf16), w1r_ref[idx - 1],
                     preferred_element_type=jnp.float32)
             + jnp.dot(a[k:k + n, :].astype(bf16), w2r_ref[idx - 1],
                       preferred_element_type=jnp.float32)
             + b12_ref[pl.ds(idx, 1), :])
        h = jnp.maximum(z, 0.0).astype(bf16)
        a = jnp.maximum(
            jnp.dot(h, w3_ref[idx], preferred_element_type=jnp.float32)
            + b3_ref[pl.ds(idx, 1), :], 0.0)

    # ---- final nn.Linear (fused) ----
    o_ref[0] = (jnp.dot(a.astype(bf16), wfc_ref[...],
                        preferred_element_type=jnp.float32)
                + bfc_ref[...])


# --------------------------- parameter construction --------------------------

def init_params(key, hid_channels, out_channels, n_layers):
    """Deterministic synthetic init mirroring FFTNetModel.__init__ shapes.

    Per layer (idx): in_ch = 1 if idx == 0 else hid_channels.
      conv1_1 / conv1_2: weight ~ N(0, sqrt(1/in_ch)), bias 0
      conv2:             default-style uniform weight/bias
    fc: Linear(hid, out).  Weights stored pre-transposed as (in, out), f32.
    """
    layers = []
    for idx in range(n_layers):
        in_ch = 1 if idx == 0 else hid_channels
        std = (1.0 / in_ch) ** 0.5
        key, k1, k2, k3, k4 = jax.random.split(key, 5)
        w1 = std * jax.random.normal(k1, (in_ch, hid_channels), jnp.float32)
        w2 = std * jax.random.normal(k2, (in_ch, hid_channels), jnp.float32)
        b12 = jnp.zeros((1, hid_channels), jnp.float32)  # b1 = b2 = 0
        bound = (1.0 / hid_channels) ** 0.5
        w3 = jax.random.uniform(k3, (hid_channels, hid_channels), jnp.float32,
                                -bound, bound)
        b3 = jax.random.uniform(k4, (1, hid_channels), jnp.float32,
                                -bound, bound)
        layers.append((w1, w2, b12, w3, b3))

    key, kf1, kf2 = jax.random.split(key, 3)
    bound = (1.0 / hid_channels) ** 0.5
    w_fc = jax.random.uniform(kf1, (hid_channels, out_channels), jnp.float32,
                              -bound, bound)
    b_fc = jax.random.uniform(kf2, (1, out_channels), jnp.float32,
                              -bound, bound)
    return layers, (w_fc, b_fc)


def pack_params(layer_params, fc_params):
    """Pack per-layer params into a few stacked VMEM-resident arrays.

    Matmul weights are stored bf16; channel dims are zero-padded to multiples
    of 128 so MXU / output stores are lane-dense.  Padded hidden channels stay
    exactly zero through every layer (zero weights, zero biases, ReLU(0)=0),
    padded output columns are sliced off by the wrapper.
    """
    L = len(layer_params)
    H = layer_params[0][0].shape[1]
    O = fc_params[0].shape[1]
    Hp = _round_up(H, 128)
    Op = _round_up(O, 128)

    def pad2(a, rows, cols):
        return jnp.pad(a, ((0, rows - a.shape[0]), (0, cols - a.shape[1])))

    w1_0, w2_0 = layer_params[0][0], layer_params[0][1]
    w0 = pad2(jnp.concatenate([w1_0, w2_0], axis=0), 2, Hp)          # (2, Hp) f32
    b12_all = jnp.concatenate([pad2(p[2], 1, Hp) for p in layer_params], axis=0)
    b3_all = jnp.concatenate([pad2(p[4], 1, Hp) for p in layer_params], axis=0)
    w3_all = jnp.stack([pad2(p[3], Hp, Hp) for p in layer_params],
                       axis=0).astype(jnp.bfloat16)                  # (L, Hp, Hp)
    if L > 1:
        w1_rest = jnp.stack([pad2(p[0], Hp, Hp) for p in layer_params[1:]],
                            axis=0).astype(jnp.bfloat16)
        w2_rest = jnp.stack([pad2(p[1], Hp, Hp) for p in layer_params[1:]],
                            axis=0).astype(jnp.bfloat16)
    else:
        w1_rest = jnp.zeros((1, Hp, Hp), jnp.bfloat16)
        w2_rest = jnp.zeros((1, Hp, Hp), jnp.bfloat16)
    w_fc, b_fc = fc_params
    w_fc_p = pad2(w_fc, Hp, Op).astype(jnp.bfloat16)                 # (Hp, Op)
    b_fc_p = pad2(b_fc, 1, Op).astype(jnp.float32)                   # (1, Op)
    return w0, b12_all, b3_all, w3_all, w1_rest, w2_rest, w_fc_p, b_fc_p


# --------------------------- tile / VMEM budgeting ----------------------------

def _vmem_capacity_bytes():
    try:
        cap = getattr(pltpu.get_tpu_info(), "vmem_capacity_bytes", None)
        if cap:
            return int(cap)
    except Exception:
        pass
    return 64 * 1024 * 1024   # conservative fallback (fits v7x too)


def _choose_tq(t_out, halo, Hp, Op, B, vmem_limit, weight_bytes, tq_max=None):
    if tq_max is None:
        # larger tiles on 128-MiB parts (v5e/v6e), smaller on 64-MiB v7x.
        tq_max = 2048 if vmem_limit >= (80 << 20) else 1024
    # Live-temporary estimate per input row: ~10 (row, Hp) f32-equivalents
    # (a, shifted slices, z1/z2/z, relu, bf16 casts) + double-buffered output
    # rows + the (row, 1) input window.
    per_row = 10 * Hp * 4 + 2 * Op * 4 + 2 * 4
    avail = vmem_limit - 2 * weight_bytes - (4 << 20)   # weights (worst case) + slack
    tile_in_cap = max(avail, 1 << 20) // per_row
    tq = max(8, int(tile_in_cap) - halo)
    tq = min(tq, tq_max, _round_up(t_out, 8))
    if B == 1 and t_out > 8:
        # keep >= 2 grid steps so both v7x TensorCores get work.
        tq = min(tq, max(8, _round_up(-(-t_out // 2), 8)))
    return _round_up(tq, 8)


def _cost_estimate(grid, tq, ks, Hp, Op, in_bytes, out_bytes, weight_bytes):
    L = len(ks)
    flops = 0
    for idx in range(L):
        n = tq + sum(ks[idx + 1:])
        if idx == 0:
            flops += 4 * n * Hp                 # two VPU broadcast mul-adds
        else:
            flops += 2 * 2 * n * Hp * Hp        # conv1_1 + conv1_2
        flops += 2 * n * Hp * Hp                # conv2
    flops += 2 * tq * Hp * Op                   # final Linear
    flops *= grid
    return pl.CostEstimate(flops=int(flops), transcendentals=0,
                           bytes_accessed=int(in_bytes + out_bytes + weight_bytes))


# ------------------------------- full forward --------------------------------

def fftnet_model_forward(x_nct, layer_params, fc_params, n_layers, tq_max=None):
    """x_nct: (B, 1, T) as in PyTorch.  Returns (B, T - 2**n_layers + 1, O)."""
    B, c_in, T = x_nct.shape
    assert c_in == 1, "default FFTNetModel feeds a 1-channel waveform"
    L = n_layers
    ks = tuple(2 ** (L - idx - 1) for idx in range(L))      # per-layer K
    halo = 2 ** L - 1                                       # receptive field-1
    t_out = T - halo
    assert t_out > 0, "input shorter than receptive field"
    O = fc_params[0].shape[1]

    packed = pack_params(layer_params, fc_params)
    w0 = packed[0]
    Hp = w0.shape[1]
    Op = packed[6].shape[1]
    weight_bytes = sum(int(a.size) * a.dtype.itemsize for a in packed)

    vmem_limit = int(0.85 * _vmem_capacity_bytes())
    tq = _choose_tq(t_out, halo, Hp, Op, B, vmem_limit, weight_bytes, tq_max)
    n_t = pl.cdiv(t_out, tq)
    tile_in = tq + halo
    t_need = n_t * tq + halo

    # Overlapping per-batch input windows (1 channel -> ~4 B/sample; cheap).
    # TODO(synk): replace this duplicated window gather with memory_space=pl.ANY
    # + a manual make_async_copy of x_hbm.at[b, pl.ds(t*tq, tile_in)] per step.
    x_sq = x_nct[:, 0, :].astype(jnp.float32)
    x_pad = jnp.pad(x_sq, ((0, 0), (0, t_need - T)))
    win = jnp.arange(n_t)[:, None] * tq + jnp.arange(tile_in)[None, :]
    xw = x_pad[:, win].reshape(B * n_t, tile_in, 1)

    grid = B * n_t
    cost = _cost_estimate(grid, tq, ks, Hp, Op,
                          in_bytes=xw.size * 4,
                          out_bytes=grid * tq * Op * 4,
                          weight_bytes=weight_bytes)

    def _run(single_buffer_consts):
        def const_spec(arr):
            nd = arr.ndim
            imap = lambda i, _nd=nd: (0,) * _nd
            if single_buffer_consts:
                # Constant index_map -> a second pipeline buffer is pure waste.
                return pl.BlockSpec(arr.shape, imap,
                                    pipeline_mode=pl.Buffered(1))
            return pl.BlockSpec(arr.shape, imap)

        in_specs = [pl.BlockSpec((1, tile_in, 1), lambda i: (i, 0, 0))]
        in_specs += [const_spec(a) for a in packed]
        out_specs = pl.BlockSpec((1, tq, Op), lambda i: (i, 0, 0))

        return pl.pallas_call(
            functools.partial(fftnet_fused_kernel, ks=ks, tq=tq),
            out_shape=jax.ShapeDtypeStruct((grid, tq, Op), jnp.float32),
            grid=(grid,),
            in_specs=in_specs,
            out_specs=out_specs,
            compiler_params=pltpu.CompilerParams(
                dimension_semantics=("parallel",),
                vmem_limit_bytes=int(vmem_limit)),
            cost_estimate=cost,
        )(xw, *packed)

    try:
        out = _run(True)
    except Exception:
        # Fallback if this Pallas build rejects pipeline_mode / Buffered(1).
        out = _run(False)

    return out.reshape(B, n_t * tq, Op)[:, :t_out, :O]


# TODO(synk): cond_channels path (convc1/convc2) and the stateful
# forward_step / FFTNetQueue streaming mode are not exercised by the default
# FFTNetModel(cond_channels=None).forward and are not implemented here.


# --------------------------- pure-JAX reference ------------------------------

def reference_forward(x_nct, layer_params, fc_params, n_layers):
    """Mirrors the kernel numerics: f32 elementwise, bf16 matmul operands with
    f32 accumulation (same rounding as the Pallas kernel's MXU path)."""
    bf16 = jnp.bfloat16
    out = jnp.transpose(x_nct, (0, 2, 1)).astype(jnp.float32)
    for idx, (w1, w2, b12, w3, b3) in enumerate(layer_params):
        K = 2 ** (n_layers - idx - 1)
        t_out = out.shape[1] - K
        x1 = out[:, :t_out, :]
        x2 = out[:, K:, :]
        if idx == 0:
            z = x1 * w1[0] + x2 * w2[0] + b12               # in_ch == 1, f32 VPU path
        else:
            z = (jnp.dot(x1.astype(bf16), w1.astype(bf16),
                         preferred_element_type=jnp.float32)
                 + jnp.dot(x2.astype(bf16), w2.astype(bf16),
                           preferred_element_type=jnp.float32)
                 + b12)
        h = jnp.maximum(z, 0.0)
        out = jnp.maximum(
            jnp.dot(h.astype(bf16), w3.astype(bf16),
                    preferred_element_type=jnp.float32) + b3, 0.0)
    w_fc, b_fc = fc_params
    return (jnp.dot(out.astype(bf16), w_fc.astype(bf16),
                    preferred_element_type=jnp.float32) + b_fc)


# ----------------------------------- main ------------------------------------

if __name__ == "__main__":
    # Small config: hid=32, out=32, n_layers=3 -> receptive field = 8.
    hid_channels = 32
    out_channels = 32
    n_layers = 3
    B, T = 2, 16  # input x: (batch, 1, time)

    key = jax.random.PRNGKey(0)
    key, kp, kx = jax.random.split(key, 3)
    layer_params, fc_params = init_params(kp, hid_channels, out_channels,
                                          n_layers)
    x = jax.random.normal(kx, (B, 1, T), jnp.float32)

    out = fftnet_model_forward(x, layer_params, fc_params, n_layers)
    out = jax.block_until_ready(out)

    expected_t = T - (2 ** n_layers - 1)
    assert out.shape == (B, expected_t, out_channels), out.shape

    ref = reference_forward(x, layer_params, fc_params, n_layers)
    ref = jax.block_until_ready(ref)
    assert jnp.allclose(out, ref, atol=5e-3, rtol=5e-3), (
        float(jnp.max(jnp.abs(out - ref))))

    print("KERNEL_OK")
</pallas_src>

<mosaic_0001>
module attributes {stable_mosaic.version = 11 : i64} {
  func.func @fftnet_fused_kernel(%arg0: i32, %arg1: memref<1x23x1xf32, #tpu.memory_space<vmem>>, %arg2: memref<2x128xf32, #tpu.memory_space<vmem>>, %arg3: memref<3x128xf32, #tpu.memory_space<vmem>>, %arg4: memref<3x128xf32, #tpu.memory_space<vmem>>, %arg5: memref<3x128x128xbf16, #tpu.memory_space<vmem>>, %arg6: memref<2x128x128xbf16, #tpu.memory_space<vmem>>, %arg7: memref<2x128x128xbf16, #tpu.memory_space<vmem>>, %arg8: memref<128x128xbf16, #tpu.memory_space<vmem>>, %arg9: memref<1x128xf32, #tpu.memory_space<vmem>>, %arg10: memref<1x16x128xf32, #tpu.memory_space<vmem>>) attributes {dimension_semantics = [#tpu.dimension_semantics<parallel>], iteration_bounds = array<i64: 2>, scalar_prefetch = 0 : i64, scratch_operands = 0 : i64, tpu.core_type = #tpu.core_type<tc>, window_params = [{transform_indices = @transform_0, window_bounds = array<i64: 1, 23, 1>}, {pipeline_mode = #tpu.pipeline_mode<synchronous>, transform_indices = @transform_1, window_bounds = array<i64: 2, 128>}, {pipeline_mode = #tpu.pipeline_mode<synchronous>, transform_indices = @transform_2, window_bounds = array<i64: 3, 128>}, {pipeline_mode = #tpu.pipeline_mode<synchronous>, transform_indices = @transform_3, window_bounds = array<i64: 3, 128>}, {pipeline_mode = #tpu.pipeline_mode<synchronous>, transform_indices = @transform_4, window_bounds = array<i64: 3, 128, 128>}, {pipeline_mode = #tpu.pipeline_mode<synchronous>, transform_indices = @transform_5, window_bounds = array<i64: 2, 128, 128>}, {pipeline_mode = #tpu.pipeline_mode<synchronous>, transform_indices = @transform_6, window_bounds = array<i64: 2, 128, 128>}, {pipeline_mode = #tpu.pipeline_mode<synchronous>, transform_indices = @transform_7, window_bounds = array<i64: 128, 128>}, {pipeline_mode = #tpu.pipeline_mode<synchronous>, transform_indices = @transform_8, window_bounds = array<i64: 1, 128>}, {transform_indices = @transform_9, window_bounds = array<i64: 1, 16, 128>}]} {
    %c0 = arith.constant 0 : index
    %c0_0 = arith.constant 0 : index
    %c0_1 = arith.constant 0 : index
    %0 = vector.load %arg1[%c0, %c0_0, %c0_1] : memref<1x23x1xf32, #tpu.memory_space<vmem>>, vector<1x23x1xf32>
    %1 = vector.shape_cast %0 : vector<1x23x1xf32> to vector<23x1xf32>
    %2 = vector.extract_strided_slice %1 {offsets = [0, 0], sizes = [19, 1], strides = [1, 1]} : vector<23x1xf32> to vector<19x1xf32>
    %c0_2 = arith.constant 0 : index
    %c0_3 = arith.constant 0 : index
    %3 = vector.load %arg2[%c0_2, %c0_3] : memref<2x128xf32, #tpu.memory_space<vmem>>, vector<1x128xf32>
    %4 = vector.broadcast %2 : vector<19x1xf32> to vector<19x128xf32>
    %5 = vector.broadcast %3 : vector<1x128xf32> to vector<19x128xf32>
    %6 = arith.mulf %4, %5 : vector<19x128xf32>
    %7 = vector.extract_strided_slice %1 {offsets = [4, 0], sizes = [19, 1], strides = [1, 1]} : vector<23x1xf32> to vector<19x1xf32>
    %c1 = arith.constant 1 : index
    %c0_4 = arith.constant 0 : index
    %8 = vector.load %arg2[%c1, %c0_4] : memref<2x128xf32, #tpu.memory_space<vmem>>, vector<1x128xf32>
    %9 = vector.broadcast %7 : vector<19x1xf32> to vector<19x128xf32>
    %10 = vector.broadcast %8 : vector<1x128xf32> to vector<19x128xf32>
    %11 = arith.mulf %9, %10 : vector<19x128xf32>
    %12 = arith.addf %6, %11 : vector<19x128xf32>
    %c0_5 = arith.constant 0 : index
    %c0_6 = arith.constant 0 : index
    %13 = vector.load %arg3[%c0_5, %c0_6] : memref<3x128xf32, #tpu.memory_space<vmem>>, vector<1x128xf32>
    %14 = vector.broadcast %13 : vector<1x128xf32> to vector<19x128xf32>
    %15 = arith.addf %12, %14 : vector<19x128xf32>
    %cst = arith.constant 0.000000e+00 : f32
    %16 = vector.broadcast %cst : f32 to vector<19x128xf32>
    %17 = arith.maximumf %15, %16 : vector<19x128xf32>
    %18 = arith.truncf %17 : vector<19x128xf32> to vector<19x128xbf16>
    %c0_7 = arith.constant 0 : index
    %c0_8 = arith.constant 0 : index
    %c0_9 = arith.constant 0 : index
    %19 = vector.load %arg5[%c0_7, %c0_8, %c0_9] : memref<3x128x128xbf16, #tpu.memory_space<vmem>>, vector<1x128x128xbf16>
    %20 = vector.shape_cast %19 : vector<1x128x128xbf16> to vector<128x128xbf16>
    %cst_10 = arith.constant dense<0.000000e+00> : vector<19x128xf32>
    %21 = tpu.matmul %18, %20, %cst_10 {dimension_numbers = #tpu.dot_dimension_numbers<[1], [0], [0], [1], [0, 0, 1, 1], [], []>} : vector<19x128xbf16>, vector<128x128xbf16>, vector<19x128xf32> -> vector<19x128xf32>
    %c0_11 = arith.constant 0 : index
    %c0_12 = arith.constant 0 : index
    %22 = vector.load %arg4[%c0_11, %c0_12] : memref<3x128xf32, #tpu.memory_space<vmem>>, vector<1x128xf32>
    %23 = vector.broadcast %22 : vector<1x128xf32> to vector<19x128xf32>
    %24 = arith.addf %21, %23 : vector<19x128xf32>
    %cst_13 = arith.constant 0.000000e+00 : f32
    %25 = vector.broadcast %cst_13 : f32 to vector<19x128xf32>
    %26 = arith.maximumf %24, %25 : vector<19x128xf32>
    %27 = vector.extract_strided_slice %26 {offsets = [0, 0], sizes = [17, 128], strides = [1, 1]} : vector<19x128xf32> to vector<17x128xf32>
    %28 = arith.truncf %27 : vector<17x128xf32> to vector<17x128xbf16>
    %c0_14 = arith.constant 0 : index
    %c0_15 = arith.constant 0 : index
    %c0_16 = arith.constant 0 : index
    %29 = vector.load %arg6[%c0_14, %c0_15, %c0_16] : memref<2x128x128xbf16, #tpu.memory_space<vmem>>, vector<1x128x128xbf16>
    %30 = vector.shape_cast %29 : vector<1x128x128xbf16> to vector<128x128xbf16>
    %cst_17 = arith.constant dense<0.000000e+00> : vector<17x128xf32>
    %31 = tpu.matmul %28, %30, %cst_17 {dimension_numbers = #tpu.dot_dimension_numbers<[1], [0], [0], [1], [0, 0, 1, 1], [], []>} : vector<17x128xbf16>, vector<128x128xbf16>, vector<17x128xf32> -> vector<17x128xf32>
    %32 = vector.extract_strided_slice %26 {offsets = [2, 0], sizes = [17, 128], strides = [1, 1]} : vector<19x128xf32> to vector<17x128xf32>
    %33 = arith.truncf %32 : vector<17x128xf32> to vector<17x128xbf16>
    %c0_18 = arith.constant 0 : index
    %c0_19 = arith.constant 0 : index
    %c0_20 = arith.constant 0 : index
    %34 = vector.load %arg7[%c0_18, %c0_19, %c0_20] : memref<2x128x128xbf16, #tpu.memory_space<vmem>>, vector<1x128x128xbf16>
    %35 = vector.shape_cast %34 : vector<1x128x128xbf16> to vector<128x128xbf16>
    %cst_21 = arith.constant dense<0.000000e+00> : vector<17x128xf32>
    %36 = tpu.matmul %33, %35, %cst_21 {dimension_numbers = #tpu.dot_dimension_numbers<[1], [0], [0], [1], [0, 0, 1, 1], [], []>} : vector<17x128xbf16>, vector<128x128xbf16>, vector<17x128xf32> -> vector<17x128xf32>
    %37 = arith.addf %31, %36 : vector<17x128xf32>
    %c1_22 = arith.constant 1 : index
    %c0_23 = arith.constant 0 : index
    %38 = vector.load %arg3[%c1_22, %c0_23] : memref<3x128xf32, #tpu.memory_space<vmem>>, vector<1x128xf32>
    %39 = vector.broadcast %38 : vector<1x128xf32> to vector<17x128xf32>
    %40 = arith.addf %37, %39 : vector<17x128xf32>
    %cst_24 = arith.constant 0.000000e+00 : f32
    %41 = vector.broadcast %cst_24 : f32 to vector<17x128xf32>
    %42 = arith.maximumf %40, %41 : vector<17x128xf32>
    %43 = arith.truncf %42 : vector<17x128xf32> to vector<17x128xbf16>
    %c1_25 = arith.constant 1 : index
    %c0_26 = arith.constant 0 : index
    %c0_27 = arith.constant 0 : index
    %44 = vector.load %arg5[%c1_25, %c0_26, %c0_27] : memref<3x128x128xbf16, #tpu.memory_space<vmem>>, vector<1x128x128xbf16>
    %45 = vector.shape_cast %44 : vector<1x128x128xbf16> to vector<128x128xbf16>
    %cst_28 = arith.constant dense<0.000000e+00> : vector<17x128xf32>
    %46 = tpu.matmul %43, %45, %cst_28 {dimension_numbers = #tpu.dot_dimension_numbers<[1], [0], [0], [1], [0, 0, 1, 1], [], []>} : vector<17x128xbf16>, vector<128x128xbf16>, vector<17x128xf32> -> vector<17x128xf32>
    %c1_29 = arith.constant 1 : index
    %c0_30 = arith.constant 0 : index
    %47 = vector.load %arg4[%c1_29, %c0_30] : memref<3x128xf32, #tpu.memory_space<vmem>>, vector<1x128xf32>
    %48 = vector.broadcast %47 : vector<1x128xf32> to vector<17x128xf32>
    %49 = arith.addf %46, %48 : vector<17x128xf32>
    %cst_31 = arith.constant 0.000000e+00 : f32
    %50 = vector.broadcast %cst_31 : f32 to vector<17x128xf32>
    %51 = arith.maximumf %49, %50 : vector<17x128xf32>
    %52 = vector.extract_strided_slice %51 {offsets = [0, 0], sizes = [16, 128], strides = [1, 1]} : vector<17x128xf32> to vector<16x128xf32>
    %53 = arith.truncf %52 : vector<16x128xf32> to vector<16x128xbf16>
    %c1_32 = arith.constant 1 : index
    %c0_33 = arith.constant 0 : index
    %c0_34 = arith.constant 0 : index
    %54 = vector.load %arg6[%c1_32, %c0_33, %c0_34] : memref<2x128x128xbf16, #tpu.memory_space<vmem>>, vector<1x128x128xbf16>
    %55 = vector.shape_cast %54 : vector<1x128x128xbf16> to vector<128x128xbf16>
    %cst_35 = arith.constant dense<0.000000e+00> : vector<16x128xf32>
    %56 = tpu.matmul %53, %55, %cst_35 {dimension_numbers = #tpu.dot_dimension_numbers<[1], [0], [0], [1], [0, 0, 1, 1], [], []>} : vector<16x128xbf16>, vector<128x128xbf16>, vector<16x128xf32> -> vector<16x128xf32>
    %57 = vector.extract_strided_slice %51 {offsets = [1, 0], sizes = [16, 128], strides = [1, 1]} : vector<17x128xf32> to vector<16x128xf32>
    %58 = arith.truncf %57 : vector<16x128xf32> to vector<16x128xbf16>
    %c1_36 = arith.constant 1 : index
    %c0_37 = arith.constant 0 : index
    %c0_38 = arith.constant 0 : index
    %59 = vector.load %arg7[%c1_36, %c0_37, %c0_38] : memref<2x128x128xbf16, #tpu.memory_space<vmem>>, vector<1x128x128xbf16>
    %60 = vector.shape_cast %59 : vector<1x128x128xbf16> to vector<128x128xbf16>
    %cst_39 = arith.constant dense<0.000000e+00> : vector<16x128xf32>
    %61 = tpu.matmul %58, %60, %cst_39 {dimension_numbers = #tpu.dot_dimension_numbers<[1], [0], [0], [1], [0, 0, 1, 1], [], []>} : vector<16x128xbf16>, vector<128x128xbf16>, vector<16x128xf32> -> vector<16x128xf32>
    %62 = arith.addf %56, %61 : vector<16x128xf32>
    %c2 = arith.constant 2 : index
    %c0_40 = arith.constant 0 : index
    %63 = vector.load %arg3[%c2, %c0_40] : memref<3x128xf32, #tpu.memory_space<vmem>>, vector<1x128xf32>
    %64 = vector.broadcast %63 : vector<1x128xf32> to vector<16x128xf32>
    %65 = arith.addf %62, %64 : vector<16x128xf32>
    %cst_41 = arith.constant 0.000000e+00 : f32
    %66 = vector.broadcast %cst_41 : f32 to vector<16x128xf32>
    %67 = arith.maximumf %65, %66 : vector<16x128xf32>
    %68 = arith.truncf %67 : vector<16x128xf32> to vector<16x128xbf16>
    %c2_42 = arith.constant 2 : index
    %c0_43 = arith.constant 0 : index
    %c0_44 = arith.constant 0 : index
    %69 = vector.load %arg5[%c2_42, %c0_43, %c0_44] : memref<3x128x128xbf16, #tpu.memory_space<vmem>>, vector<1x128x128xbf16>
    %70 = vector.shape_cast %69 : vector<1x128x128xbf16> to vector<128x128xbf16>
    %cst_45 = arith.constant dense<0.000000e+00> : vector<16x128xf32>
    %71 = tpu.matmul %68, %70, %cst_45 {dimension_numbers = #tpu.dot_dimension_numbers<[1], [0], [0], [1], [0, 0, 1, 1], [], []>} : vector<16x128xbf16>, vector<128x128xbf16>, vector<16x128xf32> -> vector<16x128xf32>
    %c2_46 = arith.constant 2 : index
    %c0_47 = arith.constant 0 : index
    %72 = vector.load %arg4[%c2_46, %c0_47] : memref<3x128xf32, #tpu.memory_space<vmem>>, vector<1x128xf32>
    %73 = vector.broadcast %72 : vector<1x128xf32> to vector<16x128xf32>
    %74 = arith.addf %71, %73 : vector<16x128xf32>
    %cst_48 = arith.constant 0.000000e+00 : f32
    %75 = vector.broadcast %cst_48 : f32 to vector<16x128xf32>
    %76 = arith.maximumf %74, %75 : vector<16x128xf32>
    %77 = arith.truncf %76 : vector<16x128xf32> to vector<16x128xbf16>
    %c0_49 = arith.constant 0 : index
    %c0_50 = arith.constant 0 : index
    %78 = vector.load %arg8[%c0_49, %c0_50] : memref<128x128xbf16, #tpu.memory_space<vmem>>, vector<128x128xbf16>
    %cst_51 = arith.constant dense<0.000000e+00> : vector<16x128xf32>
    %79 = tpu.matmul %77, %78, %cst_51 {dimension_numbers = #tpu.dot_dimension_numbers<[1], [0], [0], [1], [0, 0, 1, 1], [], []>} : vector<16x128xbf16>, vector<128x128xbf16>, vector<16x128xf32> -> vector<16x128xf32>
    %c0_52 = arith.constant 0 : index
    %c0_53 = arith.constant 0 : index
    %80 = vector.load %arg9[%c0_52, %c0_53] : memref<1x128xf32, #tpu.memory_space<vmem>>, vector<1x128xf32>
    %81 = vector.broadcast %80 : vector<1x128xf32> to vector<16x128xf32>
    %82 = arith.addf %79, %81 : vector<16x128xf32>
    %c0_54 = arith.constant 0 : index
    %c0_55 = arith.constant 0 : index
    %c0_56 = arith.constant 0 : index
    %83 = vector.load %arg10[%c0_54, %c0_55, %c0_56] : memref<1x16x128xf32, #tpu.memory_space<vmem>>, vector<1x16x128xf32>
    %84 = vector.shape_cast %83 : vector<1x16x128xf32> to vector<16x128xf32>
    %85 = vector.shape_cast %82 : vector<16x128xf32> to vector<1x16x128xf32>
    tpu.vector_store %arg10[%c0_54, %c0_55, %c0_56], %85 {strides = array<i32>} : memref<1x16x128xf32, #tpu.memory_space<vmem>>, vector<1x16x128xf32>,
    return
  }
  func.func @transform_0(%arg0: i32) -> (i32, i32, i32) {
    %c0_i32 = arith.constant 0 : i32
    %c0_i32_0 = arith.constant 0 : i32
    %c0_i32_1 = arith.constant 0 : i32
    return %arg0, %c0_i32, %c0_i32_0 : i32, i32, i32
  }
  func.func @transform_1(%arg0: i32) -> (i32, i32) {
    %c0_i32 = arith.constant 0 : i32
    %c0_i32_0 = arith.constant 0 : i32
    %c0_i32_1 = arith.constant 0 : i32
    return %c0_i32, %c0_i32_0 : i32, i32
  }
  func.func @transform_2(%arg0: i32) -> (i32, i32) {
    %c0_i32 = arith.constant 0 : i32
    %c0_i32_0 = arith.constant 0 : i32
    %c0_i32_1 = arith.constant 0 : i32
    return %c0_i32, %c0_i32_0 : i32, i32
  }
  func.func @transform_3(%arg0: i32) -> (i32, i32) {
    %c0_i32 = arith.constant 0 : i32
    %c0_i32_0 = arith.constant 0 : i32
    %c0_i32_1 = arith.constant 0 : i32
    return %c0_i32, %c0_i32_0 : i32, i32
  }
  func.func @transform_4(%arg0: i32) -> (i32, i32, i32) {
    %c0_i32 = arith.constant 0 : i32
    %c0_i32_0 = arith.constant 0 : i32
    %c0_i32_1 = arith.constant 0 : i32
    %c0_i32_2 = arith.constant 0 : i32
    return %c0_i32, %c0_i32_0, %c0_i32_1 : i32, i32, i32
  }
  func.func @transform_5(%arg0: i32) -> (i32, i32, i32) {
    %c0_i32 = arith.constant 0 : i32
    %c0_i32_0 = arith.constant 0 : i32
    %c0_i32_1 = arith.constant 0 : i32
    %c0_i32_2 = arith.constant 0 : i32
    return %c0_i32, %c0_i32_0, %c0_i32_1 : i32, i32, i32
  }
  func.func @transform_6(%arg0: i32) -> (i32, i32, i32) {
    %c0_i32 = arith.constant 0 : i32
    %c0_i32_0 = arith.constant 0 : i32
    %c0_i32_1 = arith.constant 0 : i32
    %c0_i32_2 = arith.constant 0 : i32
    return %c0_i32, %c0_i32_0, %c0_i32_1 : i32, i32, i32
  }
  func.func @transform_7(%arg0: i32) -> (i32, i32) {
    %c0_i32 = arith.constant 0 : i32
    %c0_i32_0 = arith.constant 0 : i32
    %c0_i32_1 = arith.constant 0 : i32
    return %c0_i32, %c0_i32_0 : i32, i32
  }
  func.func @transform_8(%arg0: i32) -> (i32, i32) {
    %c0_i32 = arith.constant 0 : i32
    %c0_i32_0 = arith.constant 0 : i32
    %c0_i32_1 = arith.constant 0 : i32
    return %c0_i32, %c0_i32_0 : i32, i32
  }
  func.func @transform_9(%arg0: i32) -> (i32, i32, i32) {
    %c0_i32 = arith.constant 0 : i32
    %c0_i32_0 = arith.constant 0 : i32
    %c0_i32_1 = arith.constant 0 : i32
    return %arg0, %c0_i32, %c0_i32_0 : i32, i32, i32
  }
}

module attributes {stable_mosaic.version = 11 : i64} {
  func.func @fftnet_fused_kernel(%arg0: i32, %arg1: memref<1x23x1xf32, #tpu.memory_space<vmem>>, %arg2: memref<2x128xf32, #tpu.memory_space<vmem>>, %arg3: memref<3x128xf32, #tpu.memory_space<vmem>>, %arg4: memref<3x128xf32, #tpu.memory_space<vmem>>, %arg5: memref<3x128x128xbf16, #tpu.memory_space<vmem>>, %arg6: memref<2x128x128xbf16, #tpu.memory_space<vmem>>, %arg7: memref<2x128x128xbf16, #tpu.memory_space<vmem>>, %arg8: memref<128x128xbf16, #tpu.memory_space<vmem>>, %arg9: memref<1x128xf32, #tpu.memory_space<vmem>>, %arg10: memref<1x16x128xf32, #tpu.memory_space<vmem>>) attributes {dimension_semantics = [#tpu.dimension_semantics<parallel>], iteration_bounds = array<i64: 2>, scalar_prefetch = 0 : i64, scratch_operands = 0 : i64, tpu.core_type = #tpu.core_type<tc>, window_params = [{transform_indices = @transform_0, window_bounds = array<i64: 1, 23, 1>}, {pipeline_mode = #tpu.pipeline_mode<synchronous>, transform_indices = @transform_1, window_bounds = array<i64: 2, 128>}, {pipeline_mode = #tpu.pipeline_mode<synchronous>, transform_indices = @transform_2, window_bounds = array<i64: 3, 128>}, {pipeline_mode = #tpu.pipeline_mode<synchronous>, transform_indices = @transform_3, window_bounds = array<i64: 3, 128>}, {pipeline_mode = #tpu.pipeline_mode<synchronous>, transform_indices = @transform_4, window_bounds = array<i64: 3, 128, 128>}, {pipeline_mode = #tpu.pipeline_mode<synchronous>, transform_indices = @transform_5, window_bounds = array<i64: 2, 128, 128>}, {pipeline_mode = #tpu.pipeline_mode<synchronous>, transform_indices = @transform_6, window_bounds = array<i64: 2, 128, 128>}, {pipeline_mode = #tpu.pipeline_mode<synchronous>, transform_indices = @transform_7, window_bounds = array<i64: 128, 128>}, {pipeline_mode = #tpu.pipeline_mode<synchronous>, transform_indices = @transform_8, window_bounds = array<i64: 1, 128>}, {transform_indices = @transform_9, window_bounds = array<i64: 1, 16, 128>}]} {
    %c0 = arith.constant 0 : index
    %c0_0 = arith.constant 0 : index
    %c0_1 = arith.constant 0 : index
    %0 = vector.load %arg1[%c0, %c0_0, %c0_1] : memref<1x23x1xf32, #tpu.memory_space<vmem>>, vector<1x23x1xf32>
    %1 = vector.shape_cast %0 : vector<1x23x1xf32> to vector<23x1xf32>
    %2 = vector.extract_strided_slice %1 {offsets = [0, 0], sizes = [19, 1], strides = [1, 1]} : vector<23x1xf32> to vector<19x1xf32>
    %c0_2 = arith.constant 0 : index
    %c0_3 = arith.constant 0 : index
    %3 = vector.load %arg2[%c0_2, %c0_3] : memref<2x128xf32, #tpu.memory_space<vmem>>, vector<1x128xf32>
    %4 = vector.broadcast %2 : vector<19x1xf32> to vector<19x128xf32>
    %5 = vector.broadcast %3 : vector<1x128xf32> to vector<19x128xf32>
    %6 = arith.mulf %4, %5 : vector<19x128xf32>
    %7 = vector.extract_strided_slice %1 {offsets = [4, 0], sizes = [19, 1], strides = [1, 1]} : vector<23x1xf32> to vector<19x1xf32>
    %c1 = arith.constant 1 : index
    %c0_4 = arith.constant 0 : index
    %8 = vector.load %arg2[%c1, %c0_4] : memref<2x128xf32, #tpu.memory_space<vmem>>, vector<1x128xf32>
    %9 = vector.broadcast %7 : vector<19x1xf32> to vector<19x128xf32>
    %10 = vector.broadcast %8 : vector<1x128xf32> to vector<19x128xf32>
    %11 = arith.mulf %9, %10 : vector<19x128xf32>
    %12 = arith.addf %6, %11 : vector<19x128xf32>
    %c0_5 = arith.constant 0 : index
    %c0_6 = arith.constant 0 : index
    %13 = vector.load %arg3[%c0_5, %c0_6] : memref<3x128xf32, #tpu.memory_space<vmem>>, vector<1x128xf32>
    %14 = vector.broadcast %13 : vector<1x128xf32> to vector<19x128xf32>
    %15 = arith.addf %12, %14 : vector<19x128xf32>
    %cst = arith.constant 0.000000e+00 : f32
    %16 = vector.broadcast %cst : f32 to vector<19x128xf32>
    %17 = arith.maximumf %15, %16 : vector<19x128xf32>
    %18 = arith.truncf %17 : vector<19x128xf32> to vector<19x128xbf16>
    %c0_7 = arith.constant 0 : index
    %c0_8 = arith.constant 0 : index
    %c0_9 = arith.constant 0 : index
    %19 = vector.load %arg5[%c0_7, %c0_8, %c0_9] : memref<3x128x128xbf16, #tpu.memory_space<vmem>>, vector<1x128x128xbf16>
    %20 = vector.shape_cast %19 : vector<1x128x128xbf16> to vector<128x128xbf16>
    %cst_10 = arith.constant dense<0.000000e+00> : vector<19x128xf32>
    %21 = tpu.matmul %18, %20, %cst_10 {dimension_numbers = #tpu.dot_dimension_numbers<[1], [0], [0], [1], [0, 0, 1, 1], [], []>} : vector<19x128xbf16>, vector<128x128xbf16>, vector<19x128xf32> -> vector<19x128xf32>
    %c0_11 = arith.constant 0 : index
    %c0_12 = arith.constant 0 : index
    %22 = vector.load %arg4[%c0_11, %c0_12] : memref<3x128xf32, #tpu.memory_space<vmem>>, vector<1x128xf32>
    %23 = vector.broadcast %22 : vector<1x128xf32> to vector<19x128xf32>
    %24 = arith.addf %21, %23 : vector<19x128xf32>
    %cst_13 = arith.constant 0.000000e+00 : f32
    %25 = vector.broadcast %cst_13 : f32 to vector<19x128xf32>
    %26 = arith.maximumf %24, %25 : vector<19x128xf32>
    %27 = vector.extract_strided_slice %26 {offsets = [0, 0], sizes = [17, 128], strides = [1, 1]} : vector<19x128xf32> to vector<17x128xf32>
    %28 = arith.truncf %27 : vector<17x128xf32> to vector<17x128xbf16>
    %c0_14 = arith.constant 0 : index
    %c0_15 = arith.constant 0 : index
    %c0_16 = arith.constant 0 : index
    %29 = vector.load %arg6[%c0_14, %c0_15, %c0_16] : memref<2x128x128xbf16, #tpu.memory_space<vmem>>, vector<1x128x128xbf16>
    %30 = vector.shape_cast %29 : vector<1x128x128xbf16> to vector<128x128xbf16>
    %cst_17 = arith.constant dense<0.000000e+00> : vector<17x128xf32>
    %31 = tpu.matmul %28, %30, %cst_17 {dimension_numbers = #tpu.dot_dimension_numbers<[1], [0], [0], [1], [0, 0, 1, 1], [], []>} : vector<17x128xbf16>, vector<128x128xbf16>, vector<17x128xf32> -> vector<17x128xf32>
    %32 = vector.extract_strided_slice %26 {offsets = [2, 0], sizes = [17, 128], strides = [1, 1]} : vector<19x128xf32> to vector<17x128xf32>
    %33 = arith.truncf %32 : vector<17x128xf32> to vector<17x128xbf16>
    %c0_18 = arith.constant 0 : index
    %c0_19 = arith.constant 0 : index
    %c0_20 = arith.constant 0 : index
    %34 = vector.load %arg7[%c0_18, %c0_19, %c0_20] : memref<2x128x128xbf16, #tpu.memory_space<vmem>>, vector<1x128x128xbf16>
    %35 = vector.shape_cast %34 : vector<1x128x128xbf16> to vector<128x128xbf16>
    %cst_21 = arith.constant dense<0.000000e+00> : vector<17x128xf32>
    %36 = tpu.matmul %33, %35, %cst_21 {dimension_numbers = #tpu.dot_dimension_numbers<[1], [0], [0], [1], [0, 0, 1, 1], [], []>} : vector<17x128xbf16>, vector<128x128xbf16>, vector<17x128xf32> -> vector<17x128xf32>
    %37 = arith.addf %31, %36 : vector<17x128xf32>
    %c1_22 = arith.constant 1 : index
    %c0_23 = arith.constant 0 : index
    %38 = vector.load %arg3[%c1_22, %c0_23] : memref<3x128xf32, #tpu.memory_space<vmem>>, vector<1x128xf32>
    %39 = vector.broadcast %38 : vector<1x128xf32> to vector<17x128xf32>
    %40 = arith.addf %37, %39 : vector<17x128xf32>
    %cst_24 = arith.constant 0.000000e+00 : f32
    %41 = vector.broadcast %cst_24 : f32 to vector<17x128xf32>
    %42 = arith.maximumf %40, %41 : vector<17x128xf32>
    %43 = arith.truncf %42 : vector<17x128xf32> to vector<17x128xbf16>
    %c1_25 = arith.constant 1 : index
    %c0_26 = arith.constant 0 : index
    %c0_27 = arith.constant 0 : index
    %44 = vector.load %arg5[%c1_25, %c0_26, %c0_27] : memref<3x128x128xbf16, #tpu.memory_space<vmem>>, vector<1x128x128xbf16>
    %45 = vector.shape_cast %44 : vector<1x128x128xbf16> to vector<128x128xbf16>
    %cst_28 = arith.constant dense<0.000000e+00> : vector<17x128xf32>
    %46 = tpu.matmul %43, %45, %cst_28 {dimension_numbers = #tpu.dot_dimension_numbers<[1], [0], [0], [1], [0, 0, 1, 1], [], []>} : vector<17x128xbf16>, vector<128x128xbf16>, vector<17x128xf32> -> vector<17x128xf32>
    %c1_29 = arith.constant 1 : index
    %c0_30 = arith.constant 0 : index
    %47 = vector.load %arg4[%c1_29, %c0_30] : memref<3x128xf32, #tpu.memory_space<vmem>>, vector<1x128xf32>
    %48 = vector.broadcast %47 : vector<1x128xf32> to vector<17x128xf32>
    %49 = arith.addf %46, %48 : vector<17x128xf32>
    %cst_31 = arith.constant 0.000000e+00 : f32
    %50 = vector.broadcast %cst_31 : f32 to vector<17x128xf32>
    %51 = arith.maximumf %49, %50 : vector<17x128xf32>
    %52 = vector.extract_strided_slice %51 {offsets = [0, 0], sizes = [16, 128], strides = [1, 1]} : vector<17x128xf32> to vector<16x128xf32>
    %53 = arith.truncf %52 : vector<16x128xf32> to vector<16x128xbf16>
    %c1_32 = arith.constant 1 : index
    %c0_33 = arith.constant 0 : index
    %c0_34 = arith.constant 0 : index
    %54 = vector.load %arg6[%c1_32, %c0_33, %c0_34] : memref<2x128x128xbf16, #tpu.memory_space<vmem>>, vector<1x128x128xbf16>
    %55 = vector.shape_cast %54 : vector<1x128x128xbf16> to vector<128x128xbf16>
    %cst_35 = arith.constant dense<0.000000e+00> : vector<16x128xf32>
    %56 = tpu.matmul %53, %55, %cst_35 {dimension_numbers = #tpu.dot_dimension_numbers<[1], [0], [0], [1], [0, 0, 1, 1], [], []>} : vector<16x128xbf16>, vector<128x128xbf16>, vector<16x128xf32> -> vector<16x128xf32>
    %57 = vector.extract_strided_slice %51 {offsets = [1, 0], sizes = [16, 128], strides = [1, 1]} : vector<17x128xf32> to vector<16x128xf32>
    %58 = arith.truncf %57 : vector<16x128xf32> to vector<16x128xbf16>
    %c1_36 = arith.constant 1 : index
    %c0_37 = arith.constant 0 : index
    %c0_38 = arith.constant 0 : index
    %59 = vector.load %arg7[%c1_36, %c0_37, %c0_38] : memref<2x128x128xbf16, #tpu.memory_space<vmem>>, vector<1x128x128xbf16>
    %60 = vector.shape_cast %59 : vector<1x128x128xbf16> to vector<128x128xbf16>
    %cst_39 = arith.constant dense<0.000000e+00> : vector<16x128xf32>
    %61 = tpu.matmul %58, %60, %cst_39 {dimension_numbers = #tpu.dot_dimension_numbers<[1], [0], [0], [1], [0, 0, 1, 1], [], []>} : vector<16x128xbf16>, vector<128x128xbf16>, vector<16x128xf32> -> vector<16x128xf32>
    %62 = arith.addf %56, %61 : vector<16x128xf32>
    %c2 = arith.constant 2 : index
    %c0_40 = arith.constant 0 : index
    %63 = vector.load %arg3[%c2, %c0_40] : memref<3x128xf32, #tpu.memory_space<vmem>>, vector<1x128xf32>
    %64 = vector.broadcast %63 : vector<1x128xf32> to vector<16x128xf32>
    %65 = arith.addf %62, %64 : vector<16x128xf32>
    %cst_41 = arith.constant 0.000000e+00 : f32
    %66 = vector.broadcast %cst_41 : f32 to vector<16x128xf32>
    %67 = arith.maximumf %65, %66 : vector<16x128xf32>
    %68 = arith.truncf %67 : vector<16x128xf32> to vector<16x128xbf16>
    %c2_42 = arith.constant 2 : index
    %c0_43 = arith.constant 0 : index
    %c0_44 = arith.constant 0 : index
    %69 = vector.load %arg5[%c2_42, %c0_43, %c0_44] : memref<3x128x128xbf16, #tpu.memory_space<vmem>>, vector<1x128x128xbf16>
    %70 = vector.shape_cast %69 : vector<1x128x128xbf16> to vector<128x128xbf16>
    %cst_45 = arith.constant dense<0.000000e+00> : vector<16x128xf32>
    %71 = tpu.matmul %68, %70, %cst_45 {dimension_numbers = #tpu.dot_dimension_numbers<[1], [0], [0], [1], [0, 0, 1, 1], [], []>} : vector<16x128xbf16>, vector<128x128xbf16>, vector<16x128xf32> -> vector<16x128xf32>
    %c2_46 = arith.constant 2 : index
    %c0_47 = arith.constant 0 : index
    %72 = vector.load %arg4[%c2_46, %c0_47] : memref<3x128xf32, #tpu.memory_space<vmem>>, vector<1x128xf32>
    %73 = vector.broadcast %72 : vector<1x128xf32> to vector<16x128xf32>
    %74 = arith.addf %71, %73 : vector<16x128xf32>
    %cst_48 = arith.constant 0.000000e+00 : f32
    %75 = vector.broadcast %cst_48 : f32 to vector<16x128xf32>
    %76 = arith.maximumf %74, %75 : vector<16x128xf32>
    %77 = arith.truncf %76 : vector<16x128xf32> to vector<16x128xbf16>
    %c0_49 = arith.constant 0 : index
    %c0_50 = arith.constant 0 : index
    %78 = vector.load %arg8[%c0_49, %c0_50] : memref<128x128xbf16, #tpu.memory_space<vmem>>, vector<128x128xbf16>
    %cst_51 = arith.constant dense<0.000000e+00> : vector<16x128xf32>
    %79 = tpu.matmul %77, %78, %cst_51 {dimension_numbers = #tpu.dot_dimension_numbers<[1], [0], [0], [1], [0, 0, 1, 1], [], []>} : vector<16x128xbf16>, vector<128x128xbf16>, vector<16x128xf32> -> vector<16x128xf32>
    %c0_52 = arith.constant 0 : index
    %c0_53 = arith.constant 0 : index
    %80 = vector.load %arg9[%c0_52, %c0_53] : memref<1x128xf32, #tpu.memory_space<vmem>>, vector<1x128xf32>
    %81 = vector.broadcast %80 : vector<1x128xf32> to vector<16x128xf32>
    %82 = arith.addf %79, %81 : vector<16x128xf32>
    %c0_54 = arith.constant 0 : index
    %c0_55 = arith.constant 0 : index
    %c0_56 = arith.constant 0 : index
    %83 = vector.load %arg10[%c0_54, %c0_55, %c0_56] : memref<1x16x128xf32, #tpu.memory_space<vmem>>, vector<1x16x128xf32>
    %84 = vector.shape_cast %83 : vector<1x16x128xf32> to vector<16x128xf32>
    %85 = vector.shape_cast %82 : vector<16x128xf32> to vector<1x16x128xf32>
    tpu.vector_store %arg10[%c0_54, %c0_55, %c0_56], %85 {strides = array<i32>} : memref<1x16x128xf32, #tpu.memory_space<vmem>>, vector<1x16x128xf32>,
    return
  }
  func.func @transform_0(%arg0: i32) -> (i32, i32, i32) {
    %c0_i32 = arith.constant 0 : i32
    %c0_i32_0 = arith.constant 0 : i32
    %c0_i32_1 = arith.constant 0 : i32
    return %arg0, %c0_i32, %c0_i32_0 : i32, i32, i32
  }
  func.func @transform_1(%arg0: i32) -> (i32, i32) {
    %c0_i32 = arith.constant 0 : i32
    %c0_i32_0 = arith.constant 0 : i32
    %c0_i32_1 = arith.constant 0 : i32
    return %c0_i32, %c0_i32_0 : i32, i32
  }
  func.func @transform_2(%arg0: i32) -> (i32, i32) {
    %c0_i32 = arith.constant 0 : i32
    %c0_i32_0 = arith.constant 0 : i32
    %c0_i32_1 = arith.constant 0 : i32
    return %c0_i32, %c0_i32_0 : i32, i32
  }
  func.func @transform_3(%arg0: i32) -> (i32, i32) {
    %c0_i32 = arith.constant 0 : i32
    %c0_i32_0 = arith.constant 0 : i32
    %c0_i32_1 = arith.constant 0 : i32
    return %c0_i32, %c0_i32_0 : i32, i32
  }
  func.func @transform_4(%arg0: i32) -> (i32, i32, i32) {
    %c0_i32 = arith.constant 0 : i32
    %c0_i32_0 = arith.constant 0 : i32
    %c0_i32_1 = arith.constant 0 : i32
    %c0_i32_2 = arith.constant 0 : i32
    return %c0_i32, %c0_i32_0, %c0_i32_1 : i32, i32, i32
  }
  func.func @transform_5(%arg0: i32) -> (i32, i32, i32) {
    %c0_i32 = arith.constant 0 : i32
    %c0_i32_0 = arith.constant 0 : i32
    %c0_i32_1 = arith.constant 0 : i32
    %c0_i32_2 = arith.constant 0 : i32
    return %c0_i32, %c0_i32_0, %c0_i32_1 : i32, i32, i32
  }
  func.func @transform_6(%arg0: i32) -> (i32, i32, i32) {
    %c0_i32 = arith.constant 0 : i32
    %c0_i32_0 = arith.constant 0 : i32
    %c0_i32_1 = arith.constant 0 : i32
    %c0_i32_2 = arith.constant 0 : i32
    return %c0_i32, %c0_i32_0, %c0_i32_1 : i32, i32, i32
  }
  func.func @transform_7(%arg0: i32) -> (i32, i32) {
    %c0_i32 = arith.constant 0 : i32
    %c0_i32_0 = arith.constant 0 : i32
    %c0_i32_1 = arith.constant 0 : i32
    return %c0_i32, %c0_i32_0 : i32, i32
  }
  func.func @transform_8(%arg0: i32) -> (i32, i32) {
    %c0_i32 = arith.constant 0 : i32
    %c0_i32_0 = arith.constant 0 : i32
    %c0_i32_1 = arith.constant 0 : i32
    return %c0_i32, %c0_i32_0 : i32, i32
  }
  func.func @transform_9(%arg0: i32) -> (i32, i32, i32) {
    %c0_i32 = arith.constant 0 : i32
    %c0_i32_0 = arith.constant 0 : i32
    %c0_i32_1 = arith.constant 0 : i32
    return %arg0, %c0_i32, %c0_i32_0 : i32, i32, i32
  }
}

</mosaic_0001>

<bundles_post_ra>
// kernel: tpu_custom_call.1
= control target key start
LH: loop header
LB: loop body
LE: loop exit
PB: predicated region body
PF: predicated region fallthrough
CT: control target
= control target key end

     0   :  { %s2129_s0 = inlined_call_operand.vmem [shape: f32[2,23,1], index: 0, kind: input, shape index: {}]   ;;  %s2130_s1 = inlined_call_operand.vmem [shape: f32[2,128], index: 1, kind: input, shape index: {}]   ;;  %s2131_s2 = inlined_call_operand.vmem [shape: f32[3,128], index: 2, kind: input, shape index: {}]   ;;  %s2132_s3 = inlined_call_operand.vmem [shape: f32[3,128], index: 3, kind: input, shape index: {}]   ;;  %s2133_s4 = inlined_call_operand.hbm [shape: bf16[3,128,128], index: 4, kind: input, shape index: {}]   ;;  %s2134_s5 = inlined_call_operand.hbm [shape: bf16[2,128,128], index: 5, kind: input, shape index: {}]   ;;  %s2135_s6 = inlined_call_operand.hbm [shape: bf16[2,128,128], index: 6, kind: input, shape index: {}]   ;;  %s2136_s7 = inlined_call_operand.hbm [shape: bf16[128,128], index: 7, kind: input, shape index: {}]   ;;  %s2137_s8 = inlined_call_operand.vmem [shape: f32[1,128], index: 8, kind: input, shape index: {}]   ;;  %s2138_s9 = inlined_call_operand.hbm [shape: f32[2,16,128], index: 9, kind: output, shape index: {}]  }
   0x1   :  { %2142 = sst [smem:[#allocation18_spill]] %s2133_s4 }
   0x2   :  { %2143 = sst [smem:[#allocation19_spill]] %s2134_s5 }
   0x3   :  { %14 = vsyncpa [#allocation3], 0 }
   0x4   :  { %15 = vsyncpa [#allocation6], 0 }
   0x5   :  { %16 = vsyncpa [#allocation9], 0 }
   0x6   :  { %17 = vsyncpa [#allocation4], 0 }
   0x7   :  { %19 = vsyncpa [#allocation4 + $0x1], 0  ;;  %s1970_s30 = smov 0   ;;  %s1972_s10 = smov 0  }
   0x8   :  { %s1974_s11 = smov 0   ;;  %s1976_s12 = smov 0  }
   0x9 LB: > { %2144 = sst [smem:[#allocation15_spill]] %s1905_s11  ;;  %s1991_s13 = sadd.s32 4294967295, %s1909_s12   ;;  %s1909_s12 = sphi %s1976_s12, %s2153_s12   ;;  %s1905_s11 = sphi %s1974_s11, %s2155_s11   ;;  %s1901_s10 = sphi %s1972_s10, %s2157_s10   ;;  %s1897_s30 = sphi %s1970_s30, %s2156_s30  }
   0xa   : > { %s1278_s14 = sadd.s32 4294967294, %s1909_s12   ;;  %s1995_s15 = sadd.s32 1, %s1909_s12  }
   0xb   : > { %2145 = sst [smem:[#allocation16_spill]] %s1995_s15  ;;  %s226_s16 = sadd.s32 1, %s1905_s11 }
   0xc   : > { %s223_s17 = ssub.s32 %s1909_s12, %s1995_s15  ;;  %p236_p0 = scmp.ne.s32.totalorder %s1905_s11, %s1901_s10 }
   0xd   : > { %p224_p1 = scmp.eq.s32.totalorder %s223_s17, 0  ;;  %p237_p2 = scmp.eq.s32.totalorder %s1991_s13, 1 }
   0xe   : > { %p242_p3 = scmp.ne.s32.totalorder %s1901_s10, %s1897_s30  ;;  %p243_p4 = scmp.eq.s32.totalorder %s1278_s14, 1 }
   0xf   : > { %s2006_s18 = scalar_select %p224_p1, %s1905_s11, %s226_s16  }
  0x10   : > { %p2008_p5 = por %p237_p2, %p236_p0  ;;  %p2012_p6 = por %p243_p4, %p242_p3 }
  0x11   : > { %2146 = sst [smem:[#allocation17_spill]] %s2006_s18  ;;  %p1279_p7 = scmp.ge.s32.totalorder %s1909_s12, 1 }
  0x12   : > { %p250_p8 = scmp.lt.s32.totalorder %s1909_s12, 3  ;;  %p1654_p9 = scmp.eq.s32.totalorder %s1991_s13, 0 }
  0x13   : > { %s2150_s5 = sld [smem:[#allocation19_spill]]  ;;  %s1911_s29 = smov [#allocation5]  }
  0x14   : > { %p2019_p10 = pnand %p1279_p7, %p250_p8  ;;  %s2151_s4 = sld [smem:[#allocation18_spill]] }
  0x15   : > { %s286_s14 = sshll.u32 %s1911_s29, 4  ;;  %s1912_s16 = smov 64   ;;  %s287_s14 = int_to_ptr.vmem [resolvable:$true] %s286_s14 }
  0x16   : > { %p1637_p11 = pneg %p2019_p10  ;;  %s1913_s17 = smov 4  }
  0x17   : > { %s1914_s22 = smov [#allocation2]   ;;  %s312_s18 = sshll.u32 %s2136_s7, 4  ;;  %s313_s18 = int_to_ptr.hbm [resolvable:$true] %s312_s18 }
  0x18   : > { %p2033_p12 = pnand %p1654_p9, %p1637_p11  ;;  %s272_s23 = sshll.u32 %s1914_s22, 4  ;;  %s273_s23 = int_to_ptr.vmem [resolvable:$true] %s272_s23 }
  0x19   : > { %s284_s24 = sshll.u32 %s2150_s5, 4  ;;  %s1915_s11 = smov [#allocation7]   ;;  %s285_s24 = int_to_ptr.hbm [resolvable:$true] %s284_s24 }
  0x1a   : > { %s270_s27 = sshll.u32 %s2151_s4, 4  ;;  %s298_s4 = sshll.u32 %s2135_s6, 4  ;;  %s271_s27 = int_to_ptr.hbm [resolvable:$true] %s270_s27  ;;  %s299_s4 = int_to_ptr.hbm [resolvable:$true] %s298_s4 }
  0x1b   : > { %1643 = dma.hbm_to_vmem [thread:$0]  (!%p2033_p12), %s285_s24, 2048, %s287_s14, [#allocation6], %s1912_s16, %s1912_s16, %s1913_s17  }
  0x1c   : > { %1640 = dma.hbm_to_vmem [thread:$0]  (!%p2033_p12), %s271_s27, 3072, %s273_s23, [#allocation3], %s1912_s16, %s1912_s16, %s1913_s17  }
  0x1d   : > { %s300_s15 = sshll.u32 %s1915_s11, 4  ;;  %s1916_s24 = smov [#allocation8]   ;;  %s301_s15 = int_to_ptr.vmem [resolvable:$true] %s300_s15 }
  0x1e   : > { %1646 = dma.hbm_to_vmem [thread:$0]  (!%p2033_p12), %s299_s4, 2048, %s301_s15, [#allocation6], %s1912_s16, %s1912_s16, %s1913_s17  }
  0x1f   : > { %s314_s14 = sshll.u32 %s1916_s24, 4  ;;  %341 = sbr.rel (%p2019_p10) target bundleno = 1071 (0x42f), region = 56  ;;  %s315_s14 = int_to_ptr.vmem [resolvable:$true] %s314_s14 }
  0x20   : > { %1649 = dma.hbm_to_vmem [thread:$0]  (!%p2033_p12), %s313_s18, 1024, %s315_s14, [#allocation9], %s1912_s16, %s1912_s16, %s1913_s17  }
  0x24   : > { %1880 = dma.done.wait (%p1654_p9), [#allocation3], 3072  }
  0x25   : > { %1882 = vsyncadd (%p1654_p9), [#allocation3], 4294964224 }
  0x26   : > { %1884 = dma.done.wait (%p1654_p9), [#allocation6], 4096  }
  0x27   : > { %1886 = vsyncadd (%p1654_p9), [#allocation6], 4294963200 }
  0x28   : > { %1888 = dma.done.wait (%p1654_p9), [#allocation9], 1024  }
  0x29   : > { %1890 = vsyncadd (%p1654_p9), [#allocation9], 4294966272  ;;  %p393_p13 = scmp.lt.s32.totalorder %s1991_s13, 1  ;;  %v1917_v0 = vmov 0   ;;  %v1560_v3 = vld [vmem:[#allocation2 + $0x38] sm:$0xff]  ;;  %v1559_v4 = vld [vmem:[#allocation2 + $0x30] sm:$0xff] }
  0x2a   : > { %1704 = vset.pattern.permute.xlu0 %v1917_v0  ;;  %1705 = vset.pattern.permute.xlu1 %v1917_v0  ;;  %v1558_v6 = vld [vmem:[#allocation2 + $0x28] sm:$0xff]  ;;  %v1557_v7 = vld [vmem:[#allocation2 + $0x20] sm:$0xff]  ;;  %v1556_v8 = vld [vmem:[#allocation2 + $0x18] sm:$0xff]  ;;  %vm429_vm0 = vcmask 1043456   ;;  %vm574_vm1 = vcmask 1046528   ;;  %s1617_s16 = sshll.u32 %s1991_s13, 4 }
  0x2b   : > { %s394_s4 = scalar_select %p393_p13, %s1991_s13, 1  ;;  %517 = vmatpush.bf16.msra.mxu0 %v1560_v3  ;;  %v1555_v9 = vld [vmem:[#allocation2 + $0x10] sm:$0xff]  ;;  %v1554_v10 = vld [vmem:[#allocation2 + $0x8] sm:$0xff]  ;;  %v1553_v11 = vld [vmem:[#allocation2] sm:$0xff]  ;;  %vm846_vm2 = vsmask.f32 7424 }
  0x2c   : > { %v1707_v13 = vld [vmem:[%s2130_s1 + $0x1] ss:$0 sm:$0xff]  ;;  %v1568_v15 = vld [vmem:[#allocation5 + $0x38] sm:$0xff]  ;;  %v1706_v19 = vld [vmem:[%s2130_s1] ss:$0 sm:$0xff]  ;;  %s1171_s23 = scalar_lea.hbm %s2138_s9, %s1617_s16  ;;  %s1855_s11 = scalar_lea.hbm %s2138_s9, 32 }
  0x2d   : > { %s1618_s5 = smul.u32 24, %s394_s4  ;;  %v1576_v18 = vld [vmem:[#allocation7 + $0x38] sm:$0xff]  ;;  %694 = vmatpush.bf16.msra.mxu2 %v1568_v15  ;;  %v1567_v21 = vld [vmem:[#allocation5 + $0x30] sm:$0xff]  ;;  %v1566_v29 = vld [vmem:[#allocation5 + $0x28] sm:$0xff]  ;;  %s1174_s29 = sshll.u32 %s1171_s23, 4  ;;  %s1175_s29 = int_to_ptr.hbm [resolvable:$true] %s1174_s29 }
  0x2e   : > { %628 = vmatpush.bf16.msra.mxu1 %v1576_v18  ;;  %v1575_v23 = vld [vmem:[#allocation7 + $0x30] sm:$0xff]  ;;  %v1708_v34 = vld [vmem:[%s2131_s2] ss:$0 sm:$0xff]  ;;  %v1564_v46 = vld [vmem:[#allocation5 + $0x18] sm:$0xff]  ;;  %s1849_s14 = sshra.s32 %s1175_s29, 4  ;;  %s1850_s14 = int_to_ptr.hbm [resolvable:$true] %s1849_s14 }
  0x2f   : > { %s397_s18 = scalar_lea.vmem %s2129_s0, %s1618_s5  ;;  %518 = vmatpush.bf16.msra.mxu0 %v1559_v4  ;;  %v1565_v37 = vld [vmem:[#allocation5 + $0x20] sm:$0xff]  ;;  %v1574_v47 = vld [vmem:[#allocation7 + $0x28] sm:$0xff]  ;;  %v1563_v48 = vld [vmem:[#allocation5 + $0x10] sm:$0xff]  ;;  %s1851_s13 = scalar_lea.hbm %s1850_s14, 16 }
  0x30   : > { %v398_v1 = vld [vmem:[%s397_s18] sm:$0xff]  ;;  %v400_v2 = vld [vmem:[%s397_s18 + $0x10] sm:$0x7f]  ;;  %v399_v5 = vld [vmem:[%s397_s18 + $0x8] sm:$0xff]  ;;  %s390_s18 = sand.u32 1, %s1901_s10   ;;  %p1852_p0 = scmp.ne.s32.totalorder %s1850_s14, %s1851_s13 }
  0x31   : > { %404 = vperm.xlu0 %1704, %v398_v1   ;;  %414 = vperm.xlu1 %1705, %v400_v2   ;;  %v1573_v49 = vld [vmem:[#allocation7 + $0x20] sm:$0xff]  ;;  %v1562_v50 = vld [vmem:[#allocation5 + $0x8] sm:$0xff]  ;;  %v1572_v51 = vld [vmem:[#allocation7 + $0x18] sm:$0xff]  ;;  %s1290_s21 = sshll.u32 %s390_s18, 4  ;;  %s1160_s24 = scalar_lea.sflag [#allocation4], %s390_s18 }
  0x32   : > { %695 = vmatpush.bf16.msra.mxu2 %v1567_v21  ;;  %629 = vmatpush.bf16.msra.mxu1 %v1575_v23  ;;  %v1561_v52 = vld [vmem:[#allocation5] sm:$0xff]  ;;  %v1571_v53 = vld [vmem:[#allocation7 + $0x10] sm:$0xff]  ;;  %v1570_v54 = vld [vmem:[#allocation7 + $0x8] sm:$0xff]  ;;  %s392_s25 = scalar_lea.vmem [#allocation10], %s1290_s21  ;;  %p1853_p1 = pnand %p1852_p0, %p2008_p5 }
  0x33   : > { %519 = vmatpush.bf16.msra.mxu0 %v1558_v6  ;;  %v1569_v55 = vld [vmem:[#allocation7] sm:$0xff]  ;;  %v1584_v61 = vld [vmem:[#allocation2 + $0x78] sm:$0xff]  ;;  %v1583_v0 = vld [vmem:[#allocation2 + $0x70] sm:$0xff]  ;;  %s1172_s26 = sshll.u32 %s392_s25, 4  ;;  %p1856_p3 = scmp.lt.s32.totalorder %s1850_s14, %s2138_s9  ;;  %s1173_s26 = int_to_ptr.vmem [resolvable:$true] %s1172_s26 }
  0x34   : > { %v1709_v57 = vld [vmem:[%s2132_s3] ss:$0 sm:$0xff]  ;;  %789 = vmatpush.bf16.msra.mxu3 %v1584_v61  ;;  %v1582_v3 = vld [vmem:[#allocation2 + $0x68] sm:$0xff]  ;;  %v1592_v18 = vld [vmem:[#allocation5 + $0x78] sm:$0xff]  ;;  %p1854_p2 = pneg %p1853_p1  ;;  %p1857_p4 = scmp.lt.s32.totalorder %s1855_s11, %s1851_s13 }
  0x35   : > { %v1577_v15 = vld [vmem:[#allocation2 + $0x40] sm:$0xff]  ;;  %v1591_v21 = vld [vmem:[#allocation5 + $0x70] sm:$0xff] }
  0x36   : > { %696 = vmatpush.bf16.msra.mxu2 %v1566_v29  ;;  %630 = vmatpush.bf16.msra.mxu1 %v1574_v47  ;;  %v1710_v23 = vld [vmem:[%s2131_s2 + $0x1] ss:$0 sm:$0xff]  ;;  %p1858_p7 = por %p1857_p4, %p1856_p3 }
  0x37   : > { %520 = vmatpush.bf16.msra.mxu0 %v1557_v7  ;;  %v1585_v47 = vld [vmem:[#allocation5 + $0x40] sm:$0xff] }
  0x38   : > { %790 = vmatpush.bf16.msra.mxu3 %v1583_v0  ;;  %p1859_p8 = pnand %p1858_p7, %p1854_p2 }
  0x39   : > { %409 = vperm.xlu0 %1704, %v399_v5  }
  0x3a   : > { %697 = vmatpush.bf16.msra.mxu2 %v1565_v37  ;;  %631 = vmatpush.bf16.msra.mxu1 %v1573_v49  ;;  %v1595_v49 = vld [vmem:[#allocation7 + $0x50] sm:$0xff] }
  0x3b   : > { %521 = vmatpush.bf16.msra.mxu0 %v1556_v8 }
  0x3c   : > { %791 = vmatpush.bf16.msra.mxu3 %v1582_v3 }
  0x3e   : > { %698 = vmatpush.bf16.msra.mxu2 %v1564_v46  ;;  %632 = vmatpush.bf16.msra.mxu1 %v1572_v51  ;;  %v1597_v46 = vld [vmem:[#allocation7 + $0x60] sm:$0xff] }
  0x3f   : > { %522 = vmatpush.bf16.msra.mxu0 %v1555_v9  ;;  %v1593_v51 = vld [vmem:[#allocation7 + $0x40] sm:$0xff] }
  0x42   : > { %699 = vmatpush.bf16.msra.mxu2 %v1563_v48  ;;  %633 = vmatpush.bf16.msra.mxu1 %v1571_v53  ;;  %v1596_v48 = vld [vmem:[#allocation7 + $0x58] sm:$0xff] }
  0x43   : > { %523 = vmatpush.bf16.msra.mxu0 %v1554_v10 }
  0x46   : > { %700 = vmatpush.bf16.msra.mxu2 %v1562_v50  ;;  %634 = vmatpush.bf16.msra.mxu1 %v1570_v54  ;;  %v1594_v50 = vld [vmem:[#allocation7 + $0x48] sm:$0xff]  ;;  %v1711_v54 = vld [vmem:[%s2132_s3 + $0x1] ss:$0 sm:$0xff] }
  0x47   : > { %524 = vmatpush.bf16.msra.mxu0 %v1553_v11  ;;  %v1581_v11 = vld [vmem:[#allocation2 + $0x60] sm:$0xff] }
  0x48   : > { %792 = vmatpush.bf16.msra.mxu3 %v1581_v11  ;;  %v1605_v11 = vld [vmem:[#allocation2 + $0xa0] sm:$0xff] }
  0x4a   : > { %701 = vmatpush.bf16.msra.mxu2 %v1561_v52  ;;  %635 = vmatpush.bf16.msra.mxu1 %v1569_v55  ;;  %v1608_v52 = vld [vmem:[#allocation2 + $0xb8] sm:$0xff] }
  0x4e   : > { %970 = vmatpush.bf16.msrb.mxu1 %v1592_v18  ;;  %1058 = vmatpush.bf16.msrb.mxu2 %v1608_v52  ;;  %v1614_v18 = vld [vmem:[#allocation8 + $0x28] sm:$0xff] }
  0x52   : > { %971 = vmatpush.bf16.msrb.mxu1 %v1591_v21  ;;  %v1612_v21 = vld [vmem:[#allocation8 + $0x18] sm:$0xff] }
  0xa3   : > { %v405_v12 = vpop.permute.xlu0 %404  ;;  %v415_v14 = vpop.permute.xlu1 %414 }
  0xa4   : > { %v423_v16 = vmul.f32 %v1707_v13, %v405_v12  ;;  %v425_v17 = vmul.f32 %v1707_v13, %v415_v14  ;;  %v418_v27 = vmul.f32 %v1706_v19, %v405_v12  ;;  %v420_v40 = vmul.f32 %v1706_v19, %v415_v14  ;;  %v1580_v12 = vld [vmem:[#allocation2 + $0x58] sm:$0xff]  ;;  %v1578_v14 = vld [vmem:[#allocation2 + $0x48] sm:$0xff] }
  0xa5   : > { %793 = vmatpush.bf16.msra.mxu3 %v1580_v12  ;;  %v1604_v12 = vld [vmem:[#allocation2 + $0x98] sm:$0xff] }
  0xa6   : > { %v430_v24 = vrot.slane %v423_v16, 4  ;;  %v433_v25 = vrot.slane %v425_v17, 4 }
  0xa8   : > { %v440_v42 = vadd.f32 %v433_v25, %v420_v40 }
  0xaa   : > { %v445_v43 = vadd.f32 %v1708_v34, %v440_v42  ;;  %v1599_v42 = vld [vmem:[#allocation7 + $0x70] sm:$0xff] }
  0xab   : > { %v410_v20 = vpop.permute.xlu0 %409 }
  0xac   : > { %v424_v22 = vmul.f32 %v1707_v13, %v410_v20  ;;  %v419_v28 = vmul.f32 %v1706_v19, %v410_v20  ;;  %v448_v44 = vmax.f32 %v445_v43, 0.0  ;;  %v1579_v13 = vld [vmem:[#allocation2 + $0x50] sm:$0xff]  ;;  %v1600_v19 = vld [vmem:[#allocation7 + $0x78] sm:$0xff] }
  0xad   : > { %794 = vmatpush.bf16.msra.mxu3 %v1579_v13  ;;  %908 = vmatpush.bf16.msrb.mxu0 %v1600_v19  ;;  %v1587_v43 = vld [vmem:[#allocation5 + $0x50] sm:$0xff]  ;;  %v1613_v19 = vld [vmem:[#allocation8 + $0x20] sm:$0xff] }
  0xae   : > { %v431_v26 = vrot.slane %v424_v22, 4  ;;  %v450_v45 = vpack.c.bf16 %v448_v44, %v448_v44  ;;  %v1598_v44 = vld [vmem:[#allocation7 + $0x68] sm:$0xff]  ;;  %v1603_v13 = vld [vmem:[#allocation2 + $0x90] sm:$0xff] }
  0xb0   : > { %v432_v30 = vsel %vm429_vm0, %v430_v24, %v431_v26  ;;  %v434_v31 = vsel %vm429_vm0, %v431_v26, %v433_v25  ;;  %v1590_v24 = vld [vmem:[#allocation5 + $0x68] sm:$0xff] }
  0xb1   : > { %v439_v32 = vadd.f32 %v434_v31, %v419_v28  ;;  %v438_v33 = vadd.f32 %v432_v30, %v418_v27  ;;  %795 = vmatpush.bf16.msra.mxu3 %v1578_v14  ;;  %972 = vmatpush.bf16.msrb.mxu1 %v1590_v24  ;;  %v1589_v30 = vld [vmem:[#allocation5 + $0x60] sm:$0xff]  ;;  %v1602_v14 = vld [vmem:[#allocation2 + $0x88] sm:$0xff] }
  0xb2   : > { %909 = vmatpush.bf16.msrb.mxu0 %v1599_v42  ;;  %v1712_v24 = vld [vmem:[%s2131_s2 + $0x2] ss:$0 sm:$0xff] }
  0xb3   : > { %v443_v35 = vadd.f32 %v1708_v34, %v438_v33  ;;  %v444_v36 = vadd.f32 %v1708_v34, %v439_v32 }
  0xb5   : > { %v446_v38 = vmax.f32 %v443_v35, 0.0  ;;  %v447_v39 = vmax.f32 %v444_v36, 0.0  ;;  %796 = vmatpush.bf16.msra.mxu3 %v1577_v15  ;;  %973 = vmatpush.bf16.msrb.mxu1 %v1589_v30  ;;  %v1601_v15 = vld [vmem:[#allocation2 + $0x80] sm:$0xff] }
  0xb6   : > { %910 = vmatpush.bf16.msrb.mxu0 %v1598_v44  ;;  %v1714_v44 = vld [vmem:[%s2137_s8] ss:$0 sm:$0xff] }
  0xb7   : > { %v449_v41 = vpack.c.bf16 %v447_v39, %v446_v38 }
  0xb9   : > { %525 = vmatmul.bf16.vlgmr.msra.gmra.mxu0 %v449_v41  ;;  %v1588_v41 = vld [vmem:[#allocation5 + $0x58] sm:$0xff] }
  0xba   : > { %974 = vmatpush.bf16.msrb.mxu1 %v1588_v41  ;;  %911 = vmatpush.bf16.msrb.mxu0 %v1597_v46 }
  0xbe   : > { %975 = vmatpush.bf16.msrb.mxu1 %v1587_v43  ;;  %912 = vmatpush.bf16.msrb.mxu0 %v1596_v48 }
  0xc2   : > { %913 = vmatpush.bf16.msrb.mxu0 %v1595_v49 }
  0xc6   : > { %914 = vmatpush.bf16.msrb.mxu0 %v1594_v50 }
  0xc9   : > { %530 = vmatmul.bf16.gmra.mxu0 %v450_v45  ;;  %v1586_v45 = vld [vmem:[#allocation5 + $0x48] sm:$0xff] }
  0xca   : > { %976 = vmatpush.bf16.msrb.mxu1 %v1586_v45  ;;  %915 = vmatpush.bf16.msrb.mxu0 %v1593_v51 }
  0xce   : > { %977 = vmatpush.bf16.msrb.mxu1 %v1585_v47 }
 0x136   : > { %v526_v56 = vpop.f32.mrf.mxu0 }
 0x137   : > { %v527_v58 = vadd.f32 %v1709_v57, %v526_v56 }
 0x139   : > { %v535_v62 = vmax.f32 %v527_v58, 0.0 }
 0x13e   : > { %v528_v59 = vpop.f32.mrf.mxu0 }
 0x13f   : > { %v529_v60 = vadd.f32 %v1709_v57, %v528_v59 }
 0x141   : > { %v536_v63 = vmax.f32 %v529_v60, 0.0 }
 0x143   : > { %v538_v1 = vpack.c.bf16 %v536_v63, %v535_v62 }
 0x145   : > { %702 = vmatmul.bf16.vlgmr.msra.gmra.mxu2 %v538_v1  ;;  %v575_v7 = vrot.slane %v538_v1, 1 }
 0x146   : > { %v531_v2 = vpop.f32.mrf.mxu0 }
 0x147   : > { %v532_v4 = vadd.f32 %v1709_v57, %v531_v2 }
 0x149   : > { %v537_v5 = vmax.f32 %v532_v4, 0.0 }
 0x14b   : > { %v539_v6 = vpack.c.bf16 %v537_v5, %v537_v5 }
 0x14d   : > { %v576_v8 = vrot.slane %v539_v6, 1 }
 0x14e   : > { %v533_v9 = vpop.f32.mrf.mxu0 }
 0x14f   : > { %v577_v10 = vsel %vm574_vm1, %v575_v7, %v576_v8  ;;  %v1607_v9 = vld [vmem:[#allocation2 + $0xb0] sm:$0xff] }
 0x150   : > { %636 = vmatmul.bf16.vlgmr.msra.gmra.mxu1 %v577_v10  ;;  %1059 = vmatpush.bf16.msrb.mxu2 %v1607_v9  ;;  %v1606_v10 = vld [vmem:[#allocation2 + $0xa8] sm:$0xff] }
 0x154   : > { %1060 = vmatpush.bf16.msrb.mxu2 %v1606_v10 }
 0x155   : > { %707 = vmatmul.bf16.gmra.mxu2 %v539_v6 }
 0x158   : > { %1061 = vmatpush.bf16.msrb.mxu2 %v1605_v11 }
 0x15c   : > { %1062 = vmatpush.bf16.msrb.mxu2 %v1604_v12 }
 0x160   : > { %641 = vmatmul.bf16.gmra.mxu1 %v576_v8  ;;  %1063 = vmatpush.bf16.msrb.mxu2 %v1603_v13 }
 0x164   : > { %1064 = vmatpush.bf16.msrb.mxu2 %v1602_v14 }
 0x168   : > { %1065 = vmatpush.bf16.msrb.mxu2 %v1601_v15 }
 0x1c8   : > { %v703_v16 = vpop.f32.mrf.mxu2 }
 0x1cd   : > { %v637_v17 = vpop.f32.mrf.mxu1 }
 0x1ce   : > { %v704_v22 = vadd.f32 %v703_v16, %v637_v17  ;;  %v1616_v16 = vld [vmem:[#allocation8 + $0x38] sm:$0xff]  ;;  %v1615_v17 = vld [vmem:[#allocation8 + $0x30] sm:$0xff] }
 0x1cf   : > { %1143 = vmatpush.bf16.msrb.mxu3 %v1616_v16 }
 0x1d0   : > { %v705_v20 = vpop.f32.mrf.mxu2  ;;  %v714_v26 = vadd.f32 %v1710_v23, %v704_v22 }
 0x1d2   : > { %v717_v31 = vmax.f32 %v714_v26, 0.0 }
 0x1d3   : > { %1144 = vmatpush.bf16.msrb.mxu3 %v1615_v17 }
 0x1d5   : > { %v639_v25 = vpop.f32.mrf.mxu1 }
 0x1d6   : > { %v706_v27 = vadd.f32 %v705_v20, %v639_v25 }
 0x1d7   : > { %1145 = vmatpush.bf16.msrb.mxu3 %v1614_v18 }
 0x1d8   : > { %v715_v28 = vadd.f32 %v1710_v23, %v706_v27  ;;  %v708_v29 = vpop.f32.mrf.mxu2 }
 0x1da   : > { %v718_v32 = vmax.f32 %v715_v28, 0.0 }
 0x1db   : > { %1146 = vmatpush.bf16.msrb.mxu3 %v1613_v19 }
 0x1dc   : > { %v720_v33 = vpack.c.bf16 %v718_v32, %v717_v31 }
 0x1dd   : > { %v642_v34 = vpop.f32.mrf.mxu1 }
 0x1de   : > { %797 = vmatmul.bf16.vlgmr.msra.gmra.mxu3 %v720_v33  ;;  %v709_v35 = vadd.f32 %v708_v29, %v642_v34  ;;  %v1611_v33 = vld [vmem:[#allocation8 + $0x10] sm:$0xff]  ;;  %v1610_v34 = vld [vmem:[#allocation8 + $0x8] sm:$0xff] }
 0x1df   : > { %1147 = vmatpush.bf16.msrb.mxu3 %v1612_v21 }
 0x1e0   : > { %v710_v36 = vpop.f32.mrf.mxu2  ;;  %v716_v37 = vadd.f32 %v1710_v23, %v709_v35  ;;  %v1609_v35 = vld [vmem:[#allocation8] sm:$0xff] }
 0x1e2   : > { %v719_v39 = vmax.f32 %v716_v37, 0.0  ;;  %v1713_v37 = vld [vmem:[%s2132_s3 + $0x2] ss:$0 sm:$0xff] }
 0x1e3   : > { %1148 = vmatpush.bf16.msrb.mxu3 %v1611_v33 }
 0x1e4   : > { %v721_v40 = vpack.c.bf16 %v719_v39, %v719_v39 }
 0x1e5   : > { %v644_v38 = vpop.f32.mrf.mxu1 }
 0x1e7   : > { %1149 = vmatpush.bf16.msrb.mxu3 %v1610_v34 }
 0x1eb   : > { %1150 = vmatpush.bf16.msrb.mxu3 %v1609_v35 }
 0x1ee   : > { %802 = vmatmul.bf16.gmra.mxu3 %v721_v40 }
 0x261   : > { %v798_v53 = vpop.f32.mrf.mxu3 }
 0x262   : > { %v799_v55 = vadd.f32 %v1711_v54, %v798_v53 }
 0x264   : > { %v807_v58 = vmax.f32 %v799_v55, 0.0 }
 0x269   : > { %v800_v56 = vpop.f32.mrf.mxu3 }
 0x26a   : > { %v801_v57 = vadd.f32 %v1711_v54, %v800_v56 }
 0x26c   : > { %v808_v59 = vmax.f32 %v801_v57, 0.0 }
 0x26e   : > { %v810_v60 = vpack.c.bf16 %v808_v59, %v807_v58 }
 0x270   : > { %978 = vmatmul.bf16.vlgmr.msrb.gmra.mxu1 %v810_v60  ;;  %v850_v62 = vshll.u32 %v810_v60, 16  ;;  %v848_v3 = vshrl.u32 %v810_v60, 16 }
 0x271   : > { %v803_v61 = vpop.f32.mrf.mxu3 }
 0x272   : > { %v804_v63 = vadd.f32 %v1711_v54, %v803_v61  ;;  %v852_v1 = vrot.slane %v850_v62, 1 }
 0x274   : > { %v809_v0 = vmax.f32 %v804_v63, 0.0  ;;  %v853_v7 = vor.u32 %v852_v1, %v848_v3 }
 0x276   : > { %v828_v2 = vpack.c.bf16 %v809_v0, %v809_v0 }
 0x278   : > { %v855_v4 = vshll.u32 %v828_v2, 16 }
 0x279   : > { %v805_v5 = vpop.f32.mrf.mxu3 }
 0x27a   : > { %v857_v6 = vrot.slane %v855_v4, 1 }
 0x27c   : > { %v858_v8 = vsel %vm846_vm2, %v853_v7, %v857_v6 }
 0x27d   : > { %916 = vmatmul.bf16.vlgmr.msrb.gmra.mxu0 %v858_v8 }
 0x2ed   : > { %v979_v20 = vpop.f32.mrf.mxu1 }
 0x2f5   : > { %v981_v25 = vpop.f32.mrf.mxu1 }
 0x2fa   : > { %v917_v22 = vpop.f32.mrf.mxu0 }
 0x2fb   : > { %v980_v23 = vadd.f32 %v979_v20, %v917_v22 }
 0x2fd   : > { %v986_v27 = vadd.f32 %v1712_v24, %v980_v23 }
 0x2ff   : > { %v988_v30 = vmax.f32 %v986_v27, 0.0 }
 0x302   : > { %v919_v26 = vpop.f32.mrf.mxu0 }
 0x303   : > { %v982_v28 = vadd.f32 %v981_v25, %v919_v26 }
 0x305   : > { %v987_v29 = vadd.f32 %v1712_v24, %v982_v28 }
 0x307   : > { %v989_v31 = vmax.f32 %v987_v29, 0.0 }
 0x309   : > { %v990_v32 = vpack.c.bf16 %v989_v31, %v988_v30 }
 0x30b   : > { %1066 = vmatmul.bf16.vlgmr.msrb.gmra.mxu2 %v990_v32 }
 0x38e   : > { %v1067_v36 = vpop.f32.mrf.mxu2 }
 0x38f   : > { %v1068_v38 = vadd.f32 %v1713_v37, %v1067_v36 }
 0x391   : > { %v1072_v41 = vmax.f32 %v1068_v38, 0.0 }
 0x396   : > { %v1069_v39 = vpop.f32.mrf.mxu2 }
 0x397   : > { %v1070_v40 = vadd.f32 %v1713_v37, %v1069_v39 }
 0x399   : > { %v1073_v42 = vmax.f32 %v1070_v40, 0.0 }
 0x39b   : > { %v1074_v43 = vpack.c.bf16 %v1073_v42, %v1072_v41 }
 0x39d   : > { %1151 = vmatmul.bf16.vlgmr.msrb.gmra.mxu3 %v1074_v43 }
 0x420   : > { %v1152_v45 = vpop.f32.mrf.mxu3 }
 0x421   : > { %v1153_v46 = vadd.f32 %v1714_v44, %v1152_v45 }
 0x423   : > { %1157 = vst [vmem:[%s392_s25] sm:$0xff] %v1153_v46 }
 0x428   : > { %v1154_v47 = vpop.f32.mrf.mxu3 }
 0x429   : > { %v1155_v48 = vadd.f32 %v1714_v44, %v1154_v47 }
 0x42b   : > { %1158 = vst [vmem:[%s392_s25 + $0x8] sm:$0xff] %v1155_v48 }
 0x42c   : > { %1862 = shalt.err (!%p1859_p8)
}
 0x42d   : > { %s1918_s18 = smov 128   ;;  %s1919_s27 = smov 8  }
 0x42e   : > { %1635 = dma.vmem_to_hbm [thread:$0]  (%p2008_p5), %s1173_s26, 256, %s1175_s29, %s1160_s24, %s1918_s18, %s1918_s18, %s1919_s27  }
 0x42f PF: > { %p1662_p9 = scmp.ge.s32.totalorder %s1909_s12, 2  ;;  %s1189_s28 = sand.u32 1, %s1897_s30  }
 0x430   : > { %s1190_s16 = scalar_lea.sflag [#allocation4], %s1189_s28 }
 0x431   : > { %p1651_p10 = pnand %p1662_p9, %p2012_p6 }
 0x433   : > { %p1652_p11 = pneg %p1651_p10 }
 0x435   : > { %1892 = dma.done.wait (%p1652_p11), %s1190_s16, 256  }
 0x436   : > { %1894 = vsyncadd (%p1652_p11), %s1190_s16, 4294967040  ;;  %s2153_s12 = sld [smem:[#allocation16_spill]]  ;;  %s2156_s30 = smov %s1901_s10 }
 0x437   : > { %s2154_s17 = sld [smem:[#allocation15_spill]] }
 0x438   : > { %s2155_s11 = sld [smem:[#allocation17_spill]] }
 0x43c   : > { %p22_p12 = scmp.ge.s32.totalorder %s2153_s12, 4  }
 0x43d   : > { %s2157_s10 = smov %s2154_s17 }
 0x43e   :  { %24 = sbr.rel (!%p22_p12) target bundleno = 9 (0x9), region = 112 }
 0x443   :  { %1196 = vsyncpa [#allocation3], 1 }
 0x444   :  { %1198 = vsyncpa [#allocation3 + $0x1], 1 }
 0x445   :  { %1199 = vsyncpa [#allocation6], 1 }
 0x446   :  { %1200 = vsyncpa [#allocation9], 1 }
 0x447   :  { %1201 = vsyncpa [#allocation4], 1 }
 0x448   :  { %1203 = vsyncpa [#allocation4 + $0x1], 1 }

// kernel: tpu_custom_call.1
= control target key start
LH: loop header
LB: loop body
LE: loop exit
PB: predicated region body
PF: predicated region fallthrough
CT: control target
= control target key end

     0   :  { %s2129_s0 = inlined_call_operand.vmem [shape: f32[2,23,1], index: 0, kind: input, shape index: {}]   ;;  %s2130_s1 = inlined_call_operand.vmem [shape: f32[2,128], index: 1, kind: input, shape index: {}]   ;;  %s2131_s2 = inlined_call_operand.vmem [shape: f32[3,128], index: 2, kind: input, shape index: {}]   ;;  %s2132_s3 = inlined_call_operand.vmem [shape: f32[3,128], index: 3, kind: input, shape index: {}]   ;;  %s2133_s4 = inlined_call_operand.hbm [shape: bf16[3,128,128], index: 4, kind: input, shape index: {}]   ;;  %s2134_s5 = inlined_call_operand.hbm [shape: bf16[2,128,128], index: 5, kind: input, shape index: {}]   ;;  %s2135_s6 = inlined_call_operand.hbm [shape: bf16[2,128,128], index: 6, kind: input, shape index: {}]   ;;  %s2136_s7 = inlined_call_operand.hbm [shape: bf16[128,128], index: 7, kind: input, shape index: {}]   ;;  %s2137_s8 = inlined_call_operand.vmem [shape: f32[1,128], index: 8, kind: input, shape index: {}]   ;;  %s2138_s9 = inlined_call_operand.hbm [shape: f32[2,16,128], index: 9, kind: output, shape index: {}]  }
   0x1   :  { %2142 = sst [smem:[#allocation18_spill]] %s2133_s4 }
   0x2   :  { %2143 = sst [smem:[#allocation19_spill]] %s2134_s5 }
   0x3   :  { %14 = vsyncpa [#allocation3], 0 }
   0x4   :  { %15 = vsyncpa [#allocation6], 0 }
   0x5   :  { %16 = vsyncpa [#allocation9], 0 }
   0x6   :  { %17 = vsyncpa [#allocation4], 0 }
   0x7   :  { %19 = vsyncpa [#allocation4 + $0x1], 0  ;;  %s1970_s30 = smov 0   ;;  %s1972_s10 = smov 0  }
   0x8   :  { %s1974_s11 = smov 0   ;;  %s1976_s12 = smov 0  }
   0x9 LB: > { %2144 = sst [smem:[#allocation15_spill]] %s1905_s11  ;;  %s1991_s13 = sadd.s32 4294967295, %s1909_s12   ;;  %s1909_s12 = sphi %s1976_s12, %s2153_s12   ;;  %s1905_s11 = sphi %s1974_s11, %s2155_s11   ;;  %s1901_s10 = sphi %s1972_s10, %s2157_s10   ;;  %s1897_s30 = sphi %s1970_s30, %s2156_s30  }
   0xa   : > { %s1278_s14 = sadd.s32 4294967294, %s1909_s12   ;;  %s1995_s15 = sadd.s32 1, %s1909_s12  }
   0xb   : > { %2145 = sst [smem:[#allocation16_spill]] %s1995_s15  ;;  %s226_s16 = sadd.s32 1, %s1905_s11 }
   0xc   : > { %s223_s17 = ssub.s32 %s1909_s12, %s1995_s15  ;;  %p236_p0 = scmp.ne.s32.totalorder %s1905_s11, %s1901_s10 }
   0xd   : > { %p224_p1 = scmp.eq.s32.totalorder %s223_s17, 0  ;;  %p237_p2 = scmp.eq.s32.totalorder %s1991_s13, 1 }
   0xe   : > { %p242_p3 = scmp.ne.s32.totalorder %s1901_s10, %s1897_s30  ;;  %p243_p4 = scmp.eq.s32.totalorder %s1278_s14, 1 }
   0xf   : > { %s2006_s18 = scalar_select %p224_p1, %s1905_s11, %s226_s16  }
  0x10   : > { %p2008_p5 = por %p237_p2, %p236_p0  ;;  %p2012_p6 = por %p243_p4, %p242_p3 }
  0x11   : > { %2146 = sst [smem:[#allocation17_spill]] %s2006_s18  ;;  %p1279_p7 = scmp.ge.s32.totalorder %s1909_s12, 1 }
  0x12   : > { %p250_p8 = scmp.lt.s32.totalorder %s1909_s12, 3  ;;  %p1654_p9 = scmp.eq.s32.totalorder %s1991_s13, 0 }
  0x13   : > { %s2150_s5 = sld [smem:[#allocation19_spill]]  ;;  %s1911_s29 = smov [#allocation5]  }
  0x14   : > { %p2019_p10 = pnand %p1279_p7, %p250_p8  ;;  %s2151_s4 = sld [smem:[#allocation18_spill]] }
  0x15   : > { %s286_s14 = sshll.u32 %s1911_s29, 4  ;;  %s1912_s16 = smov 64   ;;  %s287_s14 = int_to_ptr.vmem [resolvable:$true] %s286_s14 }
  0x16   : > { %p1637_p11 = pneg %p2019_p10  ;;  %s1913_s17 = smov 4  }
  0x17   : > { %s1914_s22 = smov [#allocation2]   ;;  %s312_s18 = sshll.u32 %s2136_s7, 4  ;;  %s313_s18 = int_to_ptr.hbm [resolvable:$true] %s312_s18 }
  0x18   : > { %p2033_p12 = pnand %p1654_p9, %p1637_p11  ;;  %s272_s23 = sshll.u32 %s1914_s22, 4  ;;  %s273_s23 = int_to_ptr.vmem [resolvable:$true] %s272_s23 }
  0x19   : > { %s284_s24 = sshll.u32 %s2150_s5, 4  ;;  %s1915_s11 = smov [#allocation7]   ;;  %s285_s24 = int_to_ptr.hbm [resolvable:$true] %s284_s24 }
  0x1a   : > { %s270_s27 = sshll.u32 %s2151_s4, 4  ;;  %s298_s4 = sshll.u32 %s2135_s6, 4  ;;  %s271_s27 = int_to_ptr.hbm [resolvable:$true] %s270_s27  ;;  %s299_s4 = int_to_ptr.hbm [resolvable:$true] %s298_s4 }
  0x1b   : > { %1643 = dma.hbm_to_vmem [thread:$0]  (!%p2033_p12), %s285_s24, 2048, %s287_s14, [#allocation6], %s1912_s16, %s1912_s16, %s1913_s17  }
  0x1c   : > { %1640 = dma.hbm_to_vmem [thread:$0]  (!%p2033_p12), %s271_s27, 3072, %s273_s23, [#allocation3], %s1912_s16, %s1912_s16, %s1913_s17  }
  0x1d   : > { %s300_s15 = sshll.u32 %s1915_s11, 4  ;;  %s1916_s24 = smov [#allocation8]   ;;  %s301_s15 = int_to_ptr.vmem [resolvable:$true] %s300_s15 }
  0x1e   : > { %1646 = dma.hbm_to_vmem [thread:$0]  (!%p2033_p12), %s299_s4, 2048, %s301_s15, [#allocation6], %s1912_s16, %s1912_s16, %s1913_s17  }
  0x1f   : > { %s314_s14 = sshll.u32 %s1916_s24, 4  ;;  %341 = sbr.rel (%p2019_p10) target bundleno = 1071 (0x42f), region = 56  ;;  %s315_s14 = int_to_ptr.vmem [resolvable:$true] %s314_s14 }
  0x20   : > { %1649 = dma.hbm_to_vmem [thread:$0]  (!%p2033_p12), %s313_s18, 1024, %s315_s14, [#allocation9], %s1912_s16, %s1912_s16, %s1913_s17  }
  0x24   : > { %1880 = dma.done.wait (%p1654_p9), [#allocation3], 3072  }
  0x25   : > { %1882 = vsyncadd (%p1654_p9), [#allocation3], 4294964224 }
  0x26   : > { %1884 = dma.done.wait (%p1654_p9), [#allocation6], 4096  }
  0x27   : > { %1886 = vsyncadd (%p1654_p9), [#allocation6], 4294963200 }
  0x28   : > { %1888 = dma.done.wait (%p1654_p9), [#allocation9], 1024  }
  0x29   : > { %1890 = vsyncadd (%p1654_p9), [#allocation9], 4294966272  ;;  %p393_p13 = scmp.lt.s32.totalorder %s1991_s13, 1  ;;  %v1917_v0 = vmov 0   ;;  %v1560_v3 = vld [vmem:[#allocation2 + $0x38] sm:$0xff]  ;;  %v1559_v4 = vld [vmem:[#allocation2 + $0x30] sm:$0xff] }
  0x2a   : > { %1704 = vset.pattern.permute.xlu0 %v1917_v0  ;;  %1705 = vset.pattern.permute.xlu1 %v1917_v0  ;;  %v1558_v6 = vld [vmem:[#allocation2 + $0x28] sm:$0xff]  ;;  %v1557_v7 = vld [vmem:[#allocation2 + $0x20] sm:$0xff]  ;;  %v1556_v8 = vld [vmem:[#allocation2 + $0x18] sm:$0xff]  ;;  %vm429_vm0 = vcmask 1043456   ;;  %vm574_vm1 = vcmask 1046528   ;;  %s1617_s16 = sshll.u32 %s1991_s13, 4 }
  0x2b   : > { %s394_s4 = scalar_select %p393_p13, %s1991_s13, 1  ;;  %517 = vmatpush.bf16.msra.mxu0 %v1560_v3  ;;  %v1555_v9 = vld [vmem:[#allocation2 + $0x10] sm:$0xff]  ;;  %v1554_v10 = vld [vmem:[#allocation2 + $0x8] sm:$0xff]  ;;  %v1553_v11 = vld [vmem:[#allocation2] sm:$0xff]  ;;  %vm846_vm2 = vsmask.f32 7424 }
  0x2c   : > { %v1707_v13 = vld [vmem:[%s2130_s1 + $0x1] ss:$0 sm:$0xff]  ;;  %v1568_v15 = vld [vmem:[#allocation5 + $0x38] sm:$0xff]  ;;  %v1706_v19 = vld [vmem:[%s2130_s1] ss:$0 sm:$0xff]  ;;  %s1171_s23 = scalar_lea.hbm %s2138_s9, %s1617_s16  ;;  %s1855_s11 = scalar_lea.hbm %s2138_s9, 32 }
  0x2d   : > { %s1618_s5 = smul.u32 24, %s394_s4  ;;  %v1576_v18 = vld [vmem:[#allocation7 + $0x38] sm:$0xff]  ;;  %694 = vmatpush.bf16.msra.mxu2 %v1568_v15  ;;  %v1567_v21 = vld [vmem:[#allocation5 + $0x30] sm:$0xff]  ;;  %v1566_v29 = vld [vmem:[#allocation5 + $0x28] sm:$0xff]  ;;  %s1174_s29 = sshll.u32 %s1171_s23, 4  ;;  %s1175_s29 = int_to_ptr.hbm [resolvable:$true] %s1174_s29 }
  0x2e   : > { %628 = vmatpush.bf16.msra.mxu1 %v1576_v18  ;;  %v1575_v23 = vld [vmem:[#allocation7 + $0x30] sm:$0xff]  ;;  %v1708_v34 = vld [vmem:[%s2131_s2] ss:$0 sm:$0xff]  ;;  %v1564_v46 = vld [vmem:[#allocation5 + $0x18] sm:$0xff]  ;;  %s1849_s14 = sshra.s32 %s1175_s29, 4  ;;  %s1850_s14 = int_to_ptr.hbm [resolvable:$true] %s1849_s14 }
  0x2f   : > { %s397_s18 = scalar_lea.vmem %s2129_s0, %s1618_s5  ;;  %518 = vmatpush.bf16.msra.mxu0 %v1559_v4  ;;  %v1565_v37 = vld [vmem:[#allocation5 + $0x20] sm:$0xff]  ;;  %v1574_v47 = vld [vmem:[#allocation7 + $0x28] sm:$0xff]  ;;  %v1563_v48 = vld [vmem:[#allocation5 + $0x10] sm:$0xff]  ;;  %s1851_s13 = scalar_lea.hbm %s1850_s14, 16 }
  0x30   : > { %v398_v1 = vld [vmem:[%s397_s18] sm:$0xff]  ;;  %v400_v2 = vld [vmem:[%s397_s18 + $0x10] sm:$0x7f]  ;;  %v399_v5 = vld [vmem:[%s397_s18 + $0x8] sm:$0xff]  ;;  %s390_s18 = sand.u32 1, %s1901_s10   ;;  %p1852_p0 = scmp.ne.s32.totalorder %s1850_s14, %s1851_s13 }
  0x31   : > { %404 = vperm.xlu0 %1704, %v398_v1   ;;  %414 = vperm.xlu1 %1705, %v400_v2   ;;  %v1573_v49 = vld [vmem:[#allocation7 + $0x20] sm:$0xff]  ;;  %v1562_v50 = vld [vmem:[#allocation5 + $0x8] sm:$0xff]  ;;  %v1572_v51 = vld [vmem:[#allocation7 + $0x18] sm:$0xff]  ;;  %s1290_s21 = sshll.u32 %s390_s18, 4  ;;  %s1160_s24 = scalar_lea.sflag [#allocation4], %s390_s18 }
  0x32   : > { %695 = vmatpush.bf16.msra.mxu2 %v1567_v21  ;;  %629 = vmatpush.bf16.msra.mxu1 %v1575_v23  ;;  %v1561_v52 = vld [vmem:[#allocation5] sm:$0xff]  ;;  %v1571_v53 = vld [vmem:[#allocation7 + $0x10] sm:$0xff]  ;;  %v1570_v54 = vld [vmem:[#allocation7 + $0x8] sm:$0xff]  ;;  %s392_s25 = scalar_lea.vmem [#allocation10], %s1290_s21  ;;  %p1853_p1 = pnand %p1852_p0, %p2008_p5 }
  0x33   : > { %519 = vmatpush.bf16.msra.mxu0 %v1558_v6  ;;  %v1569_v55 = vld [vmem:[#allocation7] sm:$0xff]  ;;  %v1584_v61 = vld [vmem:[#allocation2 + $0x78] sm:$0xff]  ;;  %v1583_v0 = vld [vmem:[#allocation2 + $0x70] sm:$0xff]  ;;  %s1172_s26 = sshll.u32 %s392_s25, 4  ;;  %p1856_p3 = scmp.lt.s32.totalorder %s1850_s14, %s2138_s9  ;;  %s1173_s26 = int_to_ptr.vmem [resolvable:$true] %s1172_s26 }
  0x34   : > { %v1709_v57 = vld [vmem:[%s2132_s3] ss:$0 sm:$0xff]  ;;  %789 = vmatpush.bf16.msra.mxu3 %v1584_v61  ;;  %v1582_v3 = vld [vmem:[#allocation2 + $0x68] sm:$0xff]  ;;  %v1592_v18 = vld [vmem:[#allocation5 + $0x78] sm:$0xff]  ;;  %p1854_p2 = pneg %p1853_p1  ;;  %p1857_p4 = scmp.lt.s32.totalorder %s1855_s11, %s1851_s13 }
  0x35   : > { %v1577_v15 = vld [vmem:[#allocation2 + $0x40] sm:$0xff]  ;;  %v1591_v21 = vld [vmem:[#allocation5 + $0x70] sm:$0xff] }
  0x36   : > { %696 = vmatpush.bf16.msra.mxu2 %v1566_v29  ;;  %630 = vmatpush.bf16.msra.mxu1 %v1574_v47  ;;  %v1710_v23 = vld [vmem:[%s2131_s2 + $0x1] ss:$0 sm:$0xff]  ;;  %p1858_p7 = por %p1857_p4, %p1856_p3 }
  0x37   : > { %520 = vmatpush.bf16.msra.mxu0 %v1557_v7  ;;  %v1585_v47 = vld [vmem:[#allocation5 + $0x40] sm:$0xff] }
  0x38   : > { %790 = vmatpush.bf16.msra.mxu3 %v1583_v0  ;;  %p1859_p8 = pnand %p1858_p7, %p1854_p2 }
  0x39   : > { %409 = vperm.xlu0 %1704, %v399_v5  }
  0x3a   : > { %697 = vmatpush.bf16.msra.mxu2 %v1565_v37  ;;  %631 = vmatpush.bf16.msra.mxu1 %v1573_v49  ;;  %v1595_v49 = vld [vmem:[#allocation7 + $0x50] sm:$0xff] }
  0x3b   : > { %521 = vmatpush.bf16.msra.mxu0 %v1556_v8 }
  0x3c   : > { %791 = vmatpush.bf16.msra.mxu3 %v1582_v3 }
  0x3e   : > { %698 = vmatpush.bf16.msra.mxu2 %v1564_v46  ;;  %632 = vmatpush.bf16.msra.mxu1 %v1572_v51  ;;  %v1597_v46 = vld [vmem:[#allocation7 + $0x60] sm:$0xff] }
  0x3f   : > { %522 = vmatpush.bf16.msra.mxu0 %v1555_v9  ;;  %v1593_v51 = vld [vmem:[#allocation7 + $0x40] sm:$0xff] }
  0x42   : > { %699 = vmatpush.bf16.msra.mxu2 %v1563_v48  ;;  %633 = vmatpush.bf16.msra.mxu1 %v1571_v53  ;;  %v1596_v48 = vld [vmem:[#allocation7 + $0x58] sm:$0xff] }
  0x43   : > { %523 = vmatpush.bf16.msra.mxu0 %v1554_v10 }
  0x46   : > { %700 = vmatpush.bf16.msra.mxu2 %v1562_v50  ;;  %634 = vmatpush.bf16.msra.mxu1 %v1570_v54  ;;  %v1594_v50 = vld [vmem:[#allocation7 + $0x48] sm:$0xff]  ;;  %v1711_v54 = vld [vmem:[%s2132_s3 + $0x1] ss:$0 sm:$0xff] }
  0x47   : > { %524 = vmatpush.bf16.msra.mxu0 %v1553_v11  ;;  %v1581_v11 = vld [vmem:[#allocation2 + $0x60] sm:$0xff] }
  0x48   : > { %792 = vmatpush.bf16.msra.mxu3 %v1581_v11  ;;  %v1605_v11 = vld [vmem:[#allocation2 + $0xa0] sm:$0xff] }
  0x4a   : > { %701 = vmatpush.bf16.msra.mxu2 %v1561_v52  ;;  %635 = vmatpush.bf16.msra.mxu1 %v1569_v55  ;;  %v1608_v52 = vld [vmem:[#allocation2 + $0xb8] sm:$0xff] }
  0x4e   : > { %970 = vmatpush.bf16.msrb.mxu1 %v1592_v18  ;;  %1058 = vmatpush.bf16.msrb.mxu2 %v1608_v52  ;;  %v1614_v18 = vld [vmem:[#allocation8 + $0x28] sm:$0xff] }
  0x52   : > { %971 = vmatpush.bf16.msrb.mxu1 %v1591_v21  ;;  %v1612_v21 = vld [vmem:[#allocation8 + $0x18] sm:$0xff] }
  0xa3   : > { %v405_v12 = vpop.permute.xlu0 %404  ;;  %v415_v14 = vpop.permute.xlu1 %414 }
  0xa4   : > { %v423_v16 = vmul.f32 %v1707_v13, %v405_v12  ;;  %v425_v17 = vmul.f32 %v1707_v13, %v415_v14  ;;  %v418_v27 = vmul.f32 %v1706_v19, %v405_v12  ;;  %v420_v40 = vmul.f32 %v1706_v19, %v415_v14  ;;  %v1580_v12 = vld [vmem:[#allocation2 + $0x58] sm:$0xff]  ;;  %v1578_v14 = vld [vmem:[#allocation2 + $0x48] sm:$0xff] }
  0xa5   : > { %793 = vmatpush.bf16.msra.mxu3 %v1580_v12  ;;  %v1604_v12 = vld [vmem:[#allocation2 + $0x98] sm:$0xff] }
  0xa6   : > { %v430_v24 = vrot.slane %v423_v16, 4  ;;  %v433_v25 = vrot.slane %v425_v17, 4 }
  0xa8   : > { %v440_v42 = vadd.f32 %v433_v25, %v420_v40 }
  0xaa   : > { %v445_v43 = vadd.f32 %v1708_v34, %v440_v42  ;;  %v1599_v42 = vld [vmem:[#allocation7 + $0x70] sm:$0xff] }
  0xab   : > { %v410_v20 = vpop.permute.xlu0 %409 }
  0xac   : > { %v424_v22 = vmul.f32 %v1707_v13, %v410_v20  ;;  %v419_v28 = vmul.f32 %v1706_v19, %v410_v20  ;;  %v448_v44 = vmax.f32 %v445_v43, 0.0  ;;  %v1579_v13 = vld [vmem:[#allocation2 + $0x50] sm:$0xff]  ;;  %v1600_v19 = vld [vmem:[#allocation7 + $0x78] sm:$0xff] }
  0xad   : > { %794 = vmatpush.bf16.msra.mxu3 %v1579_v13  ;;  %908 = vmatpush.bf16.msrb.mxu0 %v1600_v19  ;;  %v1587_v43 = vld [vmem:[#allocation5 + $0x50] sm:$0xff]  ;;  %v1613_v19 = vld [vmem:[#allocation8 + $0x20] sm:$0xff] }
  0xae   : > { %v431_v26 = vrot.slane %v424_v22, 4  ;;  %v450_v45 = vpack.c.bf16 %v448_v44, %v448_v44  ;;  %v1598_v44 = vld [vmem:[#allocation7 + $0x68] sm:$0xff]  ;;  %v1603_v13 = vld [vmem:[#allocation2 + $0x90] sm:$0xff] }
  0xb0   : > { %v432_v30 = vsel %vm429_vm0, %v430_v24, %v431_v26  ;;  %v434_v31 = vsel %vm429_vm0, %v431_v26, %v433_v25  ;;  %v1590_v24 = vld [vmem:[#allocation5 + $0x68] sm:$0xff] }
  0xb1   : > { %v439_v32 = vadd.f32 %v434_v31, %v419_v28  ;;  %v438_v33 = vadd.f32 %v432_v30, %v418_v27  ;;  %795 = vmatpush.bf16.msra.mxu3 %v1578_v14  ;;  %972 = vmatpush.bf16.msrb.mxu1 %v1590_v24  ;;  %v1589_v30 = vld [vmem:[#allocation5 + $0x60] sm:$0xff]  ;;  %v1602_v14 = vld [vmem:[#allocation2 + $0x88] sm:$0xff] }
  0xb2   : > { %909 = vmatpush.bf16.msrb.mxu0 %v1599_v42  ;;  %v1712_v24 = vld [vmem:[%s2131_s2 + $0x2] ss:$0 sm:$0xff] }
  0xb3   : > { %v443_v35 = vadd.f32 %v1708_v34, %v438_v33  ;;  %v444_v36 = vadd.f32 %v1708_v34, %v439_v32 }
  0xb5   : > { %v446_v38 = vmax.f32 %v443_v35, 0.0  ;;  %v447_v39 = vmax.f32 %v444_v36, 0.0  ;;  %796 = vmatpush.bf16.msra.mxu3 %v1577_v15  ;;  %973 = vmatpush.bf16.msrb.mxu1 %v1589_v30  ;;  %v1601_v15 = vld [vmem:[#allocation2 + $0x80] sm:$0xff] }
  0xb6   : > { %910 = vmatpush.bf16.msrb.mxu0 %v1598_v44  ;;  %v1714_v44 = vld [vmem:[%s2137_s8] ss:$0 sm:$0xff] }
  0xb7   : > { %v449_v41 = vpack.c.bf16 %v447_v39, %v446_v38 }
  0xb9   : > { %525 = vmatmul.bf16.vlgmr.msra.gmra.mxu0 %v449_v41  ;;  %v1588_v41 = vld [vmem:[#allocation5 + $0x58] sm:$0xff] }
  0xba   : > { %974 = vmatpush.bf16.msrb.mxu1 %v1588_v41  ;;  %911 = vmatpush.bf16.msrb.mxu0 %v1597_v46 }
  0xbe   : > { %975 = vmatpush.bf16.msrb.mxu1 %v1587_v43  ;;  %912 = vmatpush.bf16.msrb.mxu0 %v1596_v48 }
  0xc2   : > { %913 = vmatpush.bf16.msrb.mxu0 %v1595_v49 }
  0xc6   : > { %914 = vmatpush.bf16.msrb.mxu0 %v1594_v50 }
  0xc9   : > { %530 = vmatmul.bf16.gmra.mxu0 %v450_v45  ;;  %v1586_v45 = vld [vmem:[#allocation5 + $0x48] sm:$0xff] }
  0xca   : > { %976 = vmatpush.bf16.msrb.mxu1 %v1586_v45  ;;  %915 = vmatpush.bf16.msrb.mxu0 %v1593_v51 }
  0xce   : > { %977 = vmatpush.bf16.msrb.mxu1 %v1585_v47 }
 0x136   : > { %v526_v56 = vpop.f32.mrf.mxu0 }
 0x137   : > { %v527_v58 = vadd.f32 %v1709_v57, %v526_v56 }
 0x139   : > { %v535_v62 = vmax.f32 %v527_v58, 0.0 }
 0x13e   : > { %v528_v59 = vpop.f32.mrf.mxu0 }
 0x13f   : > { %v529_v60 = vadd.f32 %v1709_v57, %v528_v59 }
 0x141   : > { %v536_v63 = vmax.f32 %v529_v60, 0.0 }
 0x143   : > { %v538_v1 = vpack.c.bf16 %v536_v63, %v535_v62 }
 0x145   : > { %702 = vmatmul.bf16.vlgmr.msra.gmra.mxu2 %v538_v1  ;;  %v575_v7 = vrot.slane %v538_v1, 1 }
 0x146   : > { %v531_v2 = vpop.f32.mrf.mxu0 }
 0x147   : > { %v532_v4 = vadd.f32 %v1709_v57, %v531_v2 }
 0x149   : > { %v537_v5 = vmax.f32 %v532_v4, 0.0 }
 0x14b   : > { %v539_v6 = vpack.c.bf16 %v537_v5, %v537_v5 }
 0x14d   : > { %v576_v8 = vrot.slane %v539_v6, 1 }
 0x14e   : > { %v533_v9 = vpop.f32.mrf.mxu0 }
 0x14f   : > { %v577_v10 = vsel %vm574_vm1, %v575_v7, %v576_v8  ;;  %v1607_v9 = vld [vmem:[#allocation2 + $0xb0] sm:$0xff] }
 0x150   : > { %636 = vmatmul.bf16.vlgmr.msra.gmra.mxu1 %v577_v10  ;;  %1059 = vmatpush.bf16.msrb.mxu2 %v1607_v9  ;;  %v1606_v10 = vld [vmem:[#allocation2 + $0xa8] sm:$0xff] }
 0x154   : > { %1060 = vmatpush.bf16.msrb.mxu2 %v1606_v10 }
 0x155   : > { %707 = vmatmul.bf16.gmra.mxu2 %v539_v6 }
 0x158   : > { %1061 = vmatpush.bf16.msrb.mxu2 %v1605_v11 }
 0x15c   : > { %1062 = vmatpush.bf16.msrb.mxu2 %v1604_v12 }
 0x160   : > { %641 = vmatmul.bf16.gmra.mxu1 %v576_v8  ;;  %1063 = vmatpush.bf16.msrb.mxu2 %v1603_v13 }
 0x164   : > { %1064 = vmatpush.bf16.msrb.mxu2 %v1602_v14 }
 0x168   : > { %1065 = vmatpush.bf16.msrb.mxu2 %v1601_v15 }
 0x1c8   : > { %v703_v16 = vpop.f32.mrf.mxu2 }
 0x1cd   : > { %v637_v17 = vpop.f32.mrf.mxu1 }
 0x1ce   : > { %v704_v22 = vadd.f32 %v703_v16, %v637_v17  ;;  %v1616_v16 = vld [vmem:[#allocation8 + $0x38] sm:$0xff]  ;;  %v1615_v17 = vld [vmem:[#allocation8 + $0x30] sm:$0xff] }
 0x1cf   : > { %1143 = vmatpush.bf16.msrb.mxu3 %v1616_v16 }
 0x1d0   : > { %v705_v20 = vpop.f32.mrf.mxu2  ;;  %v714_v26 = vadd.f32 %v1710_v23, %v704_v22 }
 0x1d2   : > { %v717_v31 = vmax.f32 %v714_v26, 0.0 }
 0x1d3   : > { %1144 = vmatpush.bf16.msrb.mxu3 %v1615_v17 }
 0x1d5   : > { %v639_v25 = vpop.f32.mrf.mxu1 }
 0x1d6   : > { %v706_v27 = vadd.f32 %v705_v20, %v639_v25 }
 0x1d7   : > { %1145 = vmatpush.bf16.msrb.mxu3 %v1614_v18 }
 0x1d8   : > { %v715_v28 = vadd.f32 %v1710_v23, %v706_v27  ;;  %v708_v29 = vpop.f32.mrf.mxu2 }
 0x1da   : > { %v718_v32 = vmax.f32 %v715_v28, 0.0 }
 0x1db   : > { %1146 = vmatpush.bf16.msrb.mxu3 %v1613_v19 }
 0x1dc   : > { %v720_v33 = vpack.c.bf16 %v718_v32, %v717_v31 }
 0x1dd   : > { %v642_v34 = vpop.f32.mrf.mxu1 }
 0x1de   : > { %797 = vmatmul.bf16.vlgmr.msra.gmra.mxu3 %v720_v33  ;;  %v709_v35 = vadd.f32 %v708_v29, %v642_v34  ;;  %v1611_v33 = vld [vmem:[#allocation8 + $0x10] sm:$0xff]  ;;  %v1610_v34 = vld [vmem:[#allocation8 + $0x8] sm:$0xff] }
 0x1df   : > { %1147 = vmatpush.bf16.msrb.mxu3 %v1612_v21 }
 0x1e0   : > { %v710_v36 = vpop.f32.mrf.mxu2  ;;  %v716_v37 = vadd.f32 %v1710_v23, %v709_v35  ;;  %v1609_v35 = vld [vmem:[#allocation8] sm:$0xff] }
 0x1e2   : > { %v719_v39 = vmax.f32 %v716_v37, 0.0  ;;  %v1713_v37 = vld [vmem:[%s2132_s3 + $0x2] ss:$0 sm:$0xff] }
 0x1e3   : > { %1148 = vmatpush.bf16.msrb.mxu3 %v1611_v33 }
 0x1e4   : > { %v721_v40 = vpack.c.bf16 %v719_v39, %v719_v39 }
 0x1e5   : > { %v644_v38 = vpop.f32.mrf.mxu1 }
 0x1e7   : > { %1149 = vmatpush.bf16.msrb.mxu3 %v1610_v34 }
 0x1eb   : > { %1150 = vmatpush.bf16.msrb.mxu3 %v1609_v35 }
 0x1ee   : > { %802 = vmatmul.bf16.gmra.mxu3 %v721_v40 }
 0x261   : > { %v798_v53 = vpop.f32.mrf.mxu3 }
 0x262   : > { %v799_v55 = vadd.f32 %v1711_v54, %v798_v53 }
 0x264   : > { %v807_v58 = vmax.f32 %v799_v55, 0.0 }
 0x269   : > { %v800_v56 = vpop.f32.mrf.mxu3 }
 0x26a   : > { %v801_v57 = vadd.f32 %v1711_v54, %v800_v56 }
 0x26c   : > { %v808_v59 = vmax.f32 %v801_v57, 0.0 }
 0x26e   : > { %v810_v60 = vpack.c.bf16 %v808_v59, %v807_v58 }
 0x270   : > { %978 = vmatmul.bf16.vlgmr.msrb.gmra.mxu1 %v810_v60  ;;  %v850_v62 = vshll.u32 %v810_v60, 16  ;;  %v848_v3 = vshrl.u32 %v810_v60, 16 }
 0x271   : > { %v803_v61 = vpop.f32.mrf.mxu3 }
 0x272   : > { %v804_v63 = vadd.f32 %v1711_v54, %v803_v61  ;;  %v852_v1 = vrot.slane %v850_v62, 1 }
 0x274   : > { %v809_v0 = vmax.f32 %v804_v63, 0.0  ;;  %v853_v7 = vor.u32 %v852_v1, %v848_v3 }
 0x276   : > { %v828_v2 = vpack.c.bf16 %v809_v0, %v809_v0 }
 0x278   : > { %v855_v4 = vshll.u32 %v828_v2, 16 }
 0x279   : > { %v805_v5 = vpop.f32.mrf.mxu3 }
 0x27a   : > { %v857_v6 = vrot.slane %v855_v4, 1 }
 0x27c   : > { %v858_v8 = vsel %vm846_vm2, %v853_v7, %v857_v6 }
 0x27d   : > { %916 = vmatmul.bf16.vlgmr.msrb.gmra.mxu0 %v858_v8 }
 0x2ed   : > { %v979_v20 = vpop.f32.mrf.mxu1 }
 0x2f5   : > { %v981_v25 = vpop.f32.mrf.mxu1 }
 0x2fa   : > { %v917_v22 = vpop.f32.mrf.mxu0 }
 0x2fb   : > { %v980_v23 = vadd.f32 %v979_v20, %v917_v22 }
 0x2fd   : > { %v986_v27 = vadd.f32 %v1712_v24, %v980_v23 }
 0x2ff   : > { %v988_v30 = vmax.f32 %v986_v27, 0.0 }
 0x302   : > { %v919_v26 = vpop.f32.mrf.mxu0 }
 0x303   : > { %v982_v28 = vadd.f32 %v981_v25, %v919_v26 }
 0x305   : > { %v987_v29 = vadd.f32 %v1712_v24, %v982_v28 }
 0x307   : > { %v989_v31 = vmax.f32 %v987_v29, 0.0 }
 0x309   : > { %v990_v32 = vpack.c.bf16 %v989_v31, %v988_v30 }
 0x30b   : > { %1066 = vmatmul.bf16.vlgmr.msrb.gmra.mxu2 %v990_v32 }
 0x38e   : > { %v1067_v36 = vpop.f32.mrf.mxu2 }
 0x38f   : > { %v1068_v38 = vadd.f32 %v1713_v37, %v1067_v36 }
 0x391   : > { %v1072_v41 = vmax.f32 %v1068_v38, 0.0 }
 0x396   : > { %v1069_v39 = vpop.f32.mrf.mxu2 }
 0x397   : > { %v1070_v40 = vadd.f32 %v1713_v37, %v1069_v39 }
 0x399   : > { %v1073_v42 = vmax.f32 %v1070_v40, 0.0 }
 0x39b   : > { %v1074_v43 = vpack.c.bf16 %v1073_v42, %v1072_v41 }
 0x39d   : > { %1151 = vmatmul.bf16.vlgmr.msrb.gmra.mxu3 %v1074_v43 }
 0x420   : > { %v1152_v45 = vpop.f32.mrf.mxu3 }
 0x421   : > { %v1153_v46 = vadd.f32 %v1714_v44, %v1152_v45 }
 0x423   : > { %1157 = vst [vmem:[%s392_s25] sm:$0xff] %v1153_v46 }
 0x428   : > { %v1154_v47 = vpop.f32.mrf.mxu3 }
 0x429   : > { %v1155_v48 = vadd.f32 %v1714_v44, %v1154_v47 }
 0x42b   : > { %1158 = vst [vmem:[%s392_s25 + $0x8] sm:$0xff] %v1155_v48 }
 0x42c   : > { %1862 = shalt.err (!%p1859_p8)
}
 0x42d   : > { %s1918_s18 = smov 128   ;;  %s1919_s27 = smov 8  }
 0x42e   : > { %1635 = dma.vmem_to_hbm [thread:$0]  (%p2008_p5), %s1173_s26, 256, %s1175_s29, %s1160_s24, %s1918_s18, %s1918_s18, %s1919_s27  }
 0x42f PF: > { %p1662_p9 = scmp.ge.s32.totalorder %s1909_s12, 2  ;;  %s1189_s28 = sand.u32 1, %s1897_s30  }
 0x430   : > { %s1190_s16 = scalar_lea.sflag [#allocation4], %s1189_s28 }
 0x431   : > { %p1651_p10 = pnand %p1662_p9, %p2012_p6 }
 0x433   : > { %p1652_p11 = pneg %p1651_p10 }
 0x435   : > { %1892 = dma.done.wait (%p1652_p11), %s1190_s16, 256  }
 0x436   : > { %1894 = vsyncadd (%p1652_p11), %s1190_s16, 4294967040  ;;  %s2153_s12 = sld [smem:[#allocation16_spill]]  ;;  %s2156_s30 = smov %s1901_s10 }
 0x437   : > { %s2154_s17 = sld [smem:[#allocation15_spill]] }
 0x438   : > { %s2155_s11 = sld [smem:[#allocation17_spill]] }
 0x43c   : > { %p22_p12 = scmp.ge.s32.totalorder %s2153_s12, 4  }
 0x43d   : > { %s2157_s10 = smov %s2154_s17 }
 0x43e   :  { %24 = sbr.rel (!%p22_p12) target bundleno = 9 (0x9), region = 112 }
 0x443   :  { %1196 = vsyncpa [#allocation3], 1 }
 0x444   :  { %1198 = vsyncpa [#allocation3 + $0x1], 1 }
 0x445   :  { %1199 = vsyncpa [#allocation6], 1 }
 0x446   :  { %1200 = vsyncpa [#allocation9], 1 }
 0x447   :  { %1201 = vsyncpa [#allocation4], 1 }
 0x448   :  { %1203 = vsyncpa [#allocation4 + $0x1], 1 }

</bundles_post_ra>
